<compile_context>
chip_gen: v6e
topology: v6e:2x2x1
jax: 0.10.0
libtpu: 0.0.40
codegen_flags: <defaults>
</compile_context>

<pallas_src>
import math
from typing import NamedTuple

import numpy as np
import jax
import jax.numpy as jnp
from jax import lax
from jax.experimental import pallas as pl
from jax.experimental.pallas import tpu as pltpu


# MXU-native operand dtype (v5e/v6e/v7x are bf16-native); accumulation and all epilogue
# math (bias, SiLU, cutoff scaling, reductions) stay in float32.
_MXU_DTYPE = jnp.bfloat16


def _mxu(a):
    return a.astype(_MXU_DTYPE)


def _ksigmoid(z):
    # In-kernel sigmoid in f32 (exp on the EUP, divide on the VPU).
    return 1.0 / (1.0 + jnp.exp(-z))


def _row_grid(m):
    """Row tile for the M grid axis: whole-M single block for small / indivisible M,
    otherwise the largest 8-aligned divisor (keeps v7x 64 MiB VMEM in budget)."""
    if m <= 256 or m % 8 != 0:
        return m, 1
    for tm in (512, 256, 128, 64, 32, 16, 8):
        if m % tm == 0:
            return tm, m // tm
    return m, 1


def _cparams(n_axes):
    return pltpu.CompilerParams(
        dimension_semantics=("parallel",) * n_axes,
        vmem_limit_bytes=32 * 1024 * 1024,
    )


def _cost(m, k, n, extra_bytes=0, transcendentals=0):
    return pl.CostEstimate(
        flops=int(2 * m * k * n),
        transcendentals=int(transcendentals),
        bytes_accessed=int(4 * (m * k + k * n + m * n) + extra_bytes),
    )


# ----------------------------------------------------------------------------
# Backward helpers: transposed-contraction matmuls (no materialized .T in XLA)
# ----------------------------------------------------------------------------
def _dot_nt_kernel(a_ref, b_ref, o_ref):
    # o = a @ b.T : contract the last axis of both operands directly on the MXU.
    o_ref[...] = lax.dot_general(
        _mxu(a_ref[...]), _mxu(b_ref[...]),
        (((1,), (1,)), ((), ())), preferred_element_type=jnp.float32)


def _dot_nt(a, b):
    m, n = a.shape
    k = b.shape[0]
    tm, gm = _row_grid(m)
    return pl.pallas_call(
        _dot_nt_kernel,
        grid=(gm,),
        in_specs=[pl.BlockSpec((tm, n), lambda i: (i, 0)),
                  pl.BlockSpec((k, n), lambda i: (0, 0))],
        out_specs=pl.BlockSpec((tm, k), lambda i: (i, 0)),
        out_shape=jax.ShapeDtypeStruct((m, k), jnp.float32),
        compiler_params=_cparams(1),
        cost_estimate=_cost(m, n, k),
    )(a, b)


def _dot_tn_kernel(a_ref, b_ref, o_ref):
    # o = a.T @ b : contract the first axis of both operands directly on the MXU.
    o_ref[...] = lax.dot_general(
        _mxu(a_ref[...]), _mxu(b_ref[...]),
        (((0,), (0,)), ((), ())), preferred_element_type=jnp.float32)


def _dot_tn(a, b):
    m, k = a.shape
    n = b.shape[1]
    return pl.pallas_call(
        _dot_tn_kernel,
        grid=(1,),
        in_specs=[pl.BlockSpec((m, k), lambda i: (0, 0)),
                  pl.BlockSpec((m, n), lambda i: (0, 0))],
        out_specs=pl.BlockSpec((k, n), lambda i: (0, 0)),
        out_shape=jax.ShapeDtypeStruct((k, n), jnp.float32),
        compiler_params=_cparams(1),
        cost_estimate=_cost(k, m, n),
    )(a, b)


# ----------------------------------------------------------------------------
# Fused forward kernels + custom VJPs
# ----------------------------------------------------------------------------
# ---- y = x @ w + b (bias epilogue fused) -----------------------------------
def _linear_kernel(x_ref, w_ref, b_ref, y_ref):
    acc = jnp.dot(_mxu(x_ref[...]), _mxu(w_ref[...]),
                  preferred_element_type=jnp.float32)
    y_ref[...] = acc + b_ref[...]


def _linear_call(x, w, b):
    m, k = x.shape
    n = w.shape[1]
    tm, gm = _row_grid(m)
    return pl.pallas_call(
        _linear_kernel,
        grid=(gm,),
        in_specs=[pl.BlockSpec((tm, k), lambda i: (i, 0)),
                  pl.BlockSpec((k, n), lambda i: (0, 0)),
                  pl.BlockSpec((1, n), lambda i: (0, 0))],
        out_specs=pl.BlockSpec((tm, n), lambda i: (i, 0)),
        out_shape=jax.ShapeDtypeStruct((m, n), jnp.float32),
        compiler_params=_cparams(1),
        cost_estimate=_cost(m, k, n),
    )(x, w, b)


@jax.custom_vjp
def pl_linear(x, w, b):
    return _linear_call(x, w, b)


def _pl_linear_fwd(x, w, b):
    return _linear_call(x, w, b), (x, w)


def _pl_linear_bwd(res, g):
    x, w = res
    return _dot_nt(g, w), _dot_tn(x, g), jnp.sum(g, axis=0, keepdims=True)


pl_linear.defvjp(_pl_linear_fwd, _pl_linear_bwd)


# ---- y = (x @ w + b) * scale  (RBF filter * cutoff, fused epilogue) --------
def _linear_scale_kernel(x_ref, w_ref, b_ref, s_ref, y_ref, z_ref):
    z = jnp.dot(_mxu(x_ref[...]), _mxu(w_ref[...]),
                preferred_element_type=jnp.float32) + b_ref[...]
    z_ref[...] = z                      # residual for the scale gradient
    y_ref[...] = z * s_ref[...]


def _linear_scale_call(x, w, b, s):
    m, k = x.shape
    n = w.shape[1]
    tm, gm = _row_grid(m)
    return pl.pallas_call(
        _linear_scale_kernel,
        grid=(gm,),
        in_specs=[pl.BlockSpec((tm, k), lambda i: (i, 0)),
                  pl.BlockSpec((k, n), lambda i: (0, 0)),
                  pl.BlockSpec((1, n), lambda i: (0, 0)),
                  pl.BlockSpec((tm, 1), lambda i: (i, 0))],
        out_specs=(pl.BlockSpec((tm, n), lambda i: (i, 0)),
                   pl.BlockSpec((tm, n), lambda i: (i, 0))),
        out_shape=(jax.ShapeDtypeStruct((m, n), jnp.float32),
                   jax.ShapeDtypeStruct((m, n), jnp.float32)),
        compiler_params=_cparams(1),
        cost_estimate=_cost(m, k, n, extra_bytes=4 * m * n),
    )(x, w, b, s)


@jax.custom_vjp
def pl_linear_scale(x, w, b, s):
    y, _ = _linear_scale_call(x, w, b, s)
    return y


def _pl_linear_scale_fwd(x, w, b, s):
    y, z = _linear_scale_call(x, w, b, s)
    return y, (x, w, s, z)


def _pl_linear_scale_bwd(res, g):
    x, w, s, z = res
    gz = g * s
    dx = _dot_nt(gz, w)
    dw = _dot_tn(x, gz)
    db = jnp.sum(gz, axis=0, keepdims=True)
    ds = jnp.sum(g * z, axis=1, keepdims=True)
    return dx, dw, db, ds


pl_linear_scale.defvjp(_pl_linear_scale_fwd, _pl_linear_scale_bwd)


# ---- y = silu(x @ w1 + b1) @ w2 + b2  (two-layer MLP fused into one kernel) -
def _mlp2_kernel(x_ref, w1_ref, b1_ref, w2_ref, b2_ref, y_ref, z1_ref):
    z1 = jnp.dot(_mxu(x_ref[...]), _mxu(w1_ref[...]),
                 preferred_element_type=jnp.float32) + b1_ref[...]
    z1_ref[...] = z1                    # residual for backward
    h = z1 * _ksigmoid(z1)              # SiLU epilogue (f32, VPU/EUP under the MXU)
    y_ref[...] = jnp.dot(_mxu(h), _mxu(w2_ref[...]),
                         preferred_element_type=jnp.float32) + b2_ref[...]


def _mlp2_call(x, w1, b1, w2, b2):
    m, k = x.shape
    hdim = w1.shape[1]
    n = w2.shape[1]
    tm, gm = _row_grid(m)
    return pl.pallas_call(
        _mlp2_kernel,
        grid=(gm,),
        in_specs=[pl.BlockSpec((tm, k), lambda i: (i, 0)),
                  pl.BlockSpec((k, hdim), lambda i: (0, 0)),
                  pl.BlockSpec((1, hdim), lambda i: (0, 0)),
                  pl.BlockSpec((hdim, n), lambda i: (0, 0)),
                  pl.BlockSpec((1, n), lambda i: (0, 0))],
        out_specs=(pl.BlockSpec((tm, n), lambda i: (i, 0)),
                   pl.BlockSpec((tm, hdim), lambda i: (i, 0))),
        out_shape=(jax.ShapeDtypeStruct((m, n), jnp.float32),
                   jax.ShapeDtypeStruct((m, hdim), jnp.float32)),
        compiler_params=_cparams(1),
        cost_estimate=pl.CostEstimate(
            flops=int(2 * m * k * hdim + 2 * m * hdim * n),
            transcendentals=int(m * hdim),
            bytes_accessed=int(4 * (m * k + k * hdim + hdim * n + m * hdim + m * n))),
    )(x, w1, b1, w2, b2)


@jax.custom_vjp
def pl_mlp2(x, w1, b1, w2, b2):
    y, _ = _mlp2_call(x, w1, b1, w2, b2)
    return y


def _pl_mlp2_fwd(x, w1, b1, w2, b2):
    y, z1 = _mlp2_call(x, w1, b1, w2, b2)
    return y, (x, w1, w2, z1)


def _pl_mlp2_bwd(res, g):
    x, w1, w2, z1 = res
    s = jax.nn.sigmoid(z1)
    h = z1 * s
    dw2 = _dot_tn(h, g)
    db2 = jnp.sum(g, axis=0, keepdims=True)
    dh = _dot_nt(g, w2)
    dz1 = dh * (s * (1.0 + z1 * (1.0 - s)))
    dx = _dot_nt(dz1, w1)
    dw1 = _dot_tn(x, dz1)
    db1 = jnp.sum(dz1, axis=0, keepdims=True)
    return dx, dw1, db1, dw2, db2


pl_mlp2.defvjp(_pl_mlp2_fwd, _pl_mlp2_bwd)


# ---- y = x @ w  (concatenated U||V map of the update block) -----------------
def _matmul_kernel(x_ref, w_ref, y_ref):
    y_ref[...] = jnp.dot(_mxu(x_ref[...]), _mxu(w_ref[...]),
                         preferred_element_type=jnp.float32)


def _matmul_call(x, w):
    m, k = x.shape
    n = w.shape[1]
    tm, gm = _row_grid(m)
    return pl.pallas_call(
        _matmul_kernel,
        grid=(gm,),
        in_specs=[pl.BlockSpec((tm, k), lambda i: (i, 0)),
                  pl.BlockSpec((k, n), lambda i: (0, 0))],
        out_specs=pl.BlockSpec((tm, n), lambda i: (i, 0)),
        out_shape=jax.ShapeDtypeStruct((m, n), jnp.float32),
        compiler_params=_cparams(1),
        cost_estimate=_cost(m, k, n),
    )(x, w)


@jax.custom_vjp
def pl_matmul(x, w):
    return _matmul_call(x, w)


def _pl_matmul_fwd(x, w):
    return _matmul_call(x, w), (x, w)


def _pl_matmul_bwd(res, g):
    x, w = res
    return _dot_nt(g, w), _dot_tn(x, g)


pl_matmul.defvjp(_pl_matmul_fwd, _pl_matmul_bwd)


# ---- energy = sum(silu(x @ w1 + b1) @ w2 + b2) fused to a (1,1) output ------
def _out_head_kernel(x_ref, w1_ref, b1_ref, w2t_ref, b2_ref, e_ref, z1_ref):
    z1 = jnp.dot(_mxu(x_ref[...]), _mxu(w1_ref[...]),
                 preferred_element_type=jnp.float32) + b1_ref[...]
    z1_ref[...] = z1
    h = z1 * _ksigmoid(z1)
    # atom_out[m] = sum_k h[m,k]*w2t[0,k] + b2 ; energy = sum_m atom_out[m]
    per_atom = jnp.sum(h * w2t_ref[...], axis=1, keepdims=True)       # (M, 1), lane reduce
    e_ref[...] = (jnp.sum(per_atom, axis=0, keepdims=True)            # (1, 1)
                  + b2_ref[...] * h.shape[0])


def _out_head_call(x, w1, b1, w2t, b2):
    m, k = x.shape
    hdim = w1.shape[1]
    return pl.pallas_call(
        _out_head_kernel,
        grid=(1,),
        in_specs=[pl.BlockSpec((m, k), lambda i: (0, 0)),
                  pl.BlockSpec((k, hdim), lambda i: (0, 0)),
                  pl.BlockSpec((1, hdim), lambda i: (0, 0)),
                  pl.BlockSpec((1, hdim), lambda i: (0, 0)),
                  pl.BlockSpec((1, 1), lambda i: (0, 0))],
        out_specs=(pl.BlockSpec((1, 1), lambda i: (0, 0)),
                   pl.BlockSpec((m, hdim), lambda i: (0, 0))),
        out_shape=(jax.ShapeDtypeStruct((1, 1), jnp.float32),
                   jax.ShapeDtypeStruct((m, hdim), jnp.float32)),
        compiler_params=_cparams(1),
        cost_estimate=pl.CostEstimate(
            flops=int(2 * m * k * hdim + 2 * m * hdim),
            transcendentals=int(m * hdim),
            bytes_accessed=int(4 * (m * k + k * hdim + m * hdim + 1))),
    )(x, w1, b1, w2t, b2)


@jax.custom_vjp
def pl_out_head(x, w1, b1, w2t, b2):
    e, _ = _out_head_call(x, w1, b1, w2t, b2)
    return e[0, 0]


def _pl_out_head_fwd(x, w1, b1, w2t, b2):
    e, z1 = _out_head_call(x, w1, b1, w2t, b2)
    return e[0, 0], (x, w1, w2t, z1)


def _pl_out_head_bwd(res, g):
    x, w1, w2t, z1 = res
    n_rows, hdim = z1.shape
    s = jax.nn.sigmoid(z1)
    h = z1 * s
    db2 = jnp.reshape(g * n_rows, (1, 1))
    dw2t = g * jnp.sum(h, axis=0, keepdims=True)                       # (1, H)
    dh = jnp.broadcast_to(g * w2t, (n_rows, hdim))                     # (N, H)
    dz1 = dh * (s * (1.0 + z1 * (1.0 - s)))
    dx = _dot_nt(dz1, w1)
    dw1 = _dot_tn(x, dz1)
    db1 = jnp.sum(dz1, axis=0, keepdims=True)
    return dx, dw1, db1, dw2t, db2


pl_out_head.defvjp(_pl_out_head_fwd, _pl_out_head_bwd)


# ----------------------------------------------------------------------------
# Config & parameter init (PyTorch-Linear-style uniform init, biases as (1, N))
# ----------------------------------------------------------------------------
class Config(NamedTuple):
    node_dim: int
    hidden_dim: int
    num_basis: int
    cutoff: float
    action_blocks: int
    max_edges: int
    embed_dim: int
    num_elements: int
    len_unit_conv: float
    prop_unit_conv: float
    grad_unit_conv: float


def _linear_params(key, fan_in, fan_out):
    kw, kb = jax.random.split(key)
    bound = 1.0 / math.sqrt(fan_in)
    w = jax.random.uniform(kw, (fan_in, fan_out), jnp.float32, -bound, bound)
    b = jax.random.uniform(kb, (1, fan_out), jnp.float32, -bound, bound)
    return w, b


def init_params(key, cfg):
    D, H, B = cfg.node_dim, cfg.hidden_dim, cfg.num_basis
    E, Z = cfg.embed_dim, cfg.num_elements
    keys = iter(jax.random.split(key, 128))
    params = {}
    params["embed_table"] = jax.random.normal(next(keys), (Z, E), jnp.float32) * 0.5
    params["embed_w"], params["embed_b"] = _linear_params(next(keys), E, D)
    params["message"] = []
    params["update"] = []
    for _ in range(cfg.action_blocks):
        mw1, mb1 = _linear_params(next(keys), D, D)
        mw2, mb2 = _linear_params(next(keys), D, 3 * D)
        rw, rb = _linear_params(next(keys), B, 3 * D)
        params["message"].append(
            {"w1": mw1, "b1": mb1, "w2": mw2, "b2": mb2, "rbf_w": rw, "rbf_b": rb})
        U = jax.random.normal(next(keys), (D, D), jnp.float32) / math.sqrt(D)
        V = jax.random.normal(next(keys), (D, D), jnp.float32) / math.sqrt(D)
        uw1, ub1 = _linear_params(next(keys), 2 * D, D)
        uw2, ub2 = _linear_params(next(keys), D, 3 * D)
        params["update"].append(
            {"UV": jnp.concatenate([U, V], axis=1),   # one (D, 2D) fused U||V map
             "w1": uw1, "b1": ub1, "w2": uw2, "b2": ub2})
    params["out1_w"], params["out1_b"] = _linear_params(next(keys), D, H)
    ow2, ob2 = _linear_params(next(keys), H, 1)
    params["out2_wT"] = ow2.T            # stored as (1, H) -> lane-dense, no in-kernel transpose
    params["out2_b"] = ob2               # (1, 1)
    # atom_sp buffer: get_atomic_energy(atom_ref) - get_atomic_energy(batom_ref)
    params["atom_sp"] = jnp.linspace(-1.0, -0.1, Z).astype(jnp.float32)
    return params


# ----------------------------------------------------------------------------
# Graph construction (host numpy) with static, 8-aligned edge padding + mask
# ----------------------------------------------------------------------------
def radius_graph(coord_np, cutoff, max_edges):
    c = np.asarray(coord_np)
    n = c.shape[0]
    diff = c[None, :, :] - c[:, None, :]
    dist = np.sqrt((diff ** 2).sum(-1))
    adj = (dist < cutoff) & (~np.eye(n, dtype=bool))
    i_idx, j_idx = np.nonzero(adj)
    e = int(i_idx.shape[0])
    # TODO(synk): torch_cluster.radius_graph caps neighbors *per node* at
    # max_num_neighbors; here max_edges is used as a global static capacity instead.
    e_pad = ((max(max_edges, e) + 7) // 8) * 8
    edge_index = np.zeros((2, e_pad), dtype=np.int32)
    edge_index[0, :e] = i_idx
    edge_index[1, :e] = j_idx
    edge_mask = np.zeros((e_pad,), dtype=np.float32)
    edge_mask[:e] = 1.0
    return jnp.asarray(edge_index), jnp.asarray(edge_mask)


# ----------------------------------------------------------------------------
# PaiNN blocks (XPainnMessage / XPainnUpdate semantics, l=1 equivariant part)
# ----------------------------------------------------------------------------
def painn_message(x_scalar, x_vector, rbf, fcut_col, rsh, i, j, p, D):
    # Fused node MLP: Linear(D,D) -> SiLU -> Linear(D,3D) in ONE Pallas kernel.
    phi = pl_mlp2(x_scalar, p["w1"], p["b1"], p["w2"], p["b2"])           # (N, 3D)
    # Fused RBF filter: (rbf @ W + b) * fcut in ONE Pallas kernel (3D=96-wide store).
    Wf = pl_linear_scale(rbf, p["rbf_w"], p["rbf_b"], fcut_col)           # (E, 3D)
    # TODO(synk): per-edge gather/scatter (phi[j], x_vector[j], .at[i].add) stay in XLA;
    # a per-block Pallas kernel with scalar-prefetched edge indices is the next step.
    msg = phi[j] * Wf
    ds = msg[:, :D]
    dv_gate = msg[:, D:2 * D]
    dvr = msg[:, 2 * D:]
    dvec = dv_gate[:, None, :] * x_vector[j] + dvr[:, None, :] * rsh[:, :, None]
    x_scalar = x_scalar.at[i].add(ds)
    x_vector = x_vector.at[i].add(dvec)
    return x_scalar, x_vector


def painn_update(x_scalar, x_vector, p, D):
    N = x_scalar.shape[0]
    xv_flat = x_vector.reshape(N * 3, D)
    # U and V share the same LHS -> one concatenated (D, 2D) MXU matmul.
    uv = pl_matmul(xv_flat, p["UV"]).reshape(N, 3, 2 * D)
    Uv = uv[..., :D]
    Vv = uv[..., D:]
    Vnorm = jnp.sqrt(jnp.sum(Vv ** 2, axis=1) + 1e-8)                     # (N, D)
    a = pl_mlp2(jnp.concatenate([x_scalar, Vnorm], axis=-1),
                p["w1"], p["b1"], p["w2"], p["b2"])                       # (N, 3D)
    a_vv, a_sv, a_ss = a[:, :D], a[:, D:2 * D], a[:, 2 * D:]
    dv = a_vv[:, None, :] * Uv
    ds = a_sv * jnp.sum(Uv * Vv, axis=1) + a_ss
    return x_scalar + ds, x_vector + dv


# ----------------------------------------------------------------------------
# Differentiable energy (embedding -> message/update blocks -> fused JitGradOut)
# ----------------------------------------------------------------------------
def _energy(params, at_no, coord, edge_index, edge_mask, cfg):
    D, B, cutoff = cfg.node_dim, cfg.num_basis, cfg.cutoff
    i, j = edge_index[0], edge_index[1]

    # --- XEmbedding ---
    rij = coord[j] - coord[i]                                   # shifts are zero
    dist = jnp.sqrt(jnp.sum(rij ** 2, axis=-1) + 1e-12)
    emb = params["embed_table"][at_no]                          # (N, embed_dim)
    x_scalar = pl_linear(emb, params["embed_w"], params["embed_b"])       # (N, D)
    n_basis = jnp.arange(1, B + 1, dtype=jnp.float32)
    rbf = (jnp.sqrt(2.0 / cutoff)
           * jnp.sin(n_basis[None] * jnp.pi * dist[:, None] / cutoff) / dist[:, None])
    fcut = (0.5 * (jnp.cos(jnp.pi * dist / cutoff) + 1.0)
            * (dist < cutoff) * edge_mask)                      # mask zeroes padded edges
    rsh = rij / dist[:, None]                                   # l=1 real spherical harmonics
    # TODO(synk): original edge_irreps may include l=2 e3nn harmonics; only l=1 implemented.
    fcut_col = fcut[:, None]

    N = x_scalar.shape[0]
    x_vector = jnp.zeros((N, 3, D), jnp.float32)
    for blk in range(cfg.action_blocks):
        x_scalar, x_vector = painn_message(
            x_scalar, x_vector, rbf, fcut_col, rsh, i, j, params["message"][blk], D)
        x_scalar, x_vector = painn_update(x_scalar, x_vector, params["update"][blk], D)

    # --- JitGradOut: Linear -> SiLU -> Linear -> sum(), fused to a (1,1) output ---
    return pl_out_head(x_scalar, params["out1_w"], params["out1_b"],
                       params["out2_wT"], params["out2_b"])


def _energy_and_grad_impl(params, at_no, coord, edge_index, edge_mask, cfg):
    def energy_fn(c):
        return _energy(params, at_no, c, edge_index, edge_mask, cfg)
    return jax.value_and_grad(energy_fn)(coord)


_energy_and_grad = jax.jit(_energy_and_grad_impl, static_argnums=(5,))


# ----------------------------------------------------------------------------
# JitPaiNN.forward
# ----------------------------------------------------------------------------
def jit_painn_forward(params, at_no, coord, charge, spin, cfg):
    del charge, spin                                  # unused in the reference forward body
    coord_conv = coord * cfg.len_unit_conv            # Bohr -> length unit
    edge_index, edge_mask = radius_graph(
        np.asarray(jax.device_get(coord_conv)), cfg.cutoff, cfg.max_edges)
    # torch.autograd.grad(energy, coord) -> jax.value_and_grad w.r.t. the converted coord
    energy, nuc_grad = _energy_and_grad(params, at_no, coord_conv,
                                        edge_index, edge_mask, cfg)
    # TODO(synk): reference casts to float64 (.double()); kept float32 for TPU friendliness.
    energy = (energy + params["atom_sp"][at_no].sum()) * cfg.prop_unit_conv
    nuc_grad = nuc_grad * cfg.grad_unit_conv
    return {"energy": energy, "gradient": nuc_grad}


if __name__ == "__main__":
    BOHR2ANG = 0.529177210903
    cfg = Config(
        node_dim=32,
        hidden_dim=16,
        num_basis=16,
        cutoff=5.0,
        action_blocks=2,
        max_edges=100,
        embed_dim=16,
        num_elements=20,
        len_unit_conv=BOHR2ANG,        # unit_conversion('Bohr', len_unit)
        prop_unit_conv=1.0,            # unit_conversion(prop_unit, 'AU')
        grad_unit_conv=BOHR2ANG,       # unit_conversion(f'{prop}/{len}', 'AU')
    )

    key = jax.random.PRNGKey(0)
    k_at, k_coord, k_params = jax.random.split(key, 3)

    n_atoms = 8
    at_no = jax.random.randint(k_at, (n_atoms,), 1, cfg.num_elements)     # atomic numbers
    coord = jax.random.normal(k_coord, (n_atoms, 3), jnp.float32) * 2.0   # coords (Bohr)
    params = init_params(k_params, cfg)

    result = jit_painn_forward(params, at_no, coord, charge=0, spin=0, cfg=cfg)
    jax.block_until_ready(result["energy"])
    jax.block_until_ready(result["gradient"])

    assert result["energy"].shape == ()
    assert result["gradient"].shape == (n_atoms, 3)
    assert bool(jnp.isfinite(result["energy"]))
    assert bool(jnp.all(jnp.isfinite(result["gradient"])))
    print("KERNEL_OK")
</pallas_src>

<mosaic_0001>
module attributes {stable_mosaic.version = 11 : i64} {
  func.func @_linear_kernel(%arg0: i32, %arg1: memref<8x16xf32, #tpu.memory_space<vmem>>, %arg2: memref<16x32xf32, #tpu.memory_space<vmem>>, %arg3: memref<1x32xf32, #tpu.memory_space<vmem>>, %arg4: memref<8x32xf32, #tpu.memory_space<vmem>>) attributes {dimension_semantics = [#tpu.dimension_semantics<parallel>], iteration_bounds = array<i64: 1>, scalar_prefetch = 0 : i64, scratch_operands = 0 : i64, tpu.core_type = #tpu.core_type<tc>, window_params = [{transform_indices = @transform_0, window_bounds = array<i64: 8, 16>}, {pipeline_mode = #tpu.pipeline_mode<synchronous>, transform_indices = @transform_1, window_bounds = array<i64: 16, 32>}, {pipeline_mode = #tpu.pipeline_mode<synchronous>, transform_indices = @transform_2, window_bounds = array<i64: 1, 32>}, {transform_indices = @transform_3, window_bounds = array<i64: 8, 32>}]} {
    %c0 = arith.constant 0 : index
    %c0_0 = arith.constant 0 : index
    %0 = vector.load %arg1[%c0, %c0_0] : memref<8x16xf32, #tpu.memory_space<vmem>>, vector<8x16xf32>
    %1 = arith.truncf %0 : vector<8x16xf32> to vector<8x16xbf16>
    %c0_1 = arith.constant 0 : index
    %c0_2 = arith.constant 0 : index
    %2 = vector.load %arg2[%c0_1, %c0_2] : memref<16x32xf32, #tpu.memory_space<vmem>>, vector<16x32xf32>
    %3 = arith.truncf %2 : vector<16x32xf32> to vector<16x32xbf16>
    %cst = arith.constant dense<0.000000e+00> : vector<8x32xf32>
    %4 = tpu.matmul %1, %3, %cst {dimension_numbers = #tpu.dot_dimension_numbers<[1], [0], [0], [1], [0, 0, 1, 1], [], []>} : vector<8x16xbf16>, vector<16x32xbf16>, vector<8x32xf32> -> vector<8x32xf32>
    %c0_3 = arith.constant 0 : index
    %c0_4 = arith.constant 0 : index
    %5 = vector.load %arg3[%c0_3, %c0_4] : memref<1x32xf32, #tpu.memory_space<vmem>>, vector<1x32xf32>
    %6 = vector.broadcast %5 : vector<1x32xf32> to vector<8x32xf32>
    %7 = arith.addf %4, %6 : vector<8x32xf32>
    %c0_5 = arith.constant 0 : index
    %c0_6 = arith.constant 0 : index
    %8 = vector.load %arg4[%c0_5, %c0_6] : memref<8x32xf32, #tpu.memory_space<vmem>>, vector<8x32xf32>
    tpu.vector_store %arg4[%c0_5, %c0_6], %7 {strides = array<i32>} : memref<8x32xf32, #tpu.memory_space<vmem>>, vector<8x32xf32>,
    return
  }
  func.func @transform_0(%arg0: i32) -> (i32, i32) {
    %c0_i32 = arith.constant 0 : i32
    %c0_i32_0 = arith.constant 0 : i32
    return %arg0, %c0_i32 : i32, i32
  }
  func.func @transform_1(%arg0: i32) -> (i32, i32) {
    %c0_i32 = arith.constant 0 : i32
    %c0_i32_0 = arith.constant 0 : i32
    %c0_i32_1 = arith.constant 0 : i32
    return %c0_i32, %c0_i32_0 : i32, i32
  }
  func.func @transform_2(%arg0: i32) -> (i32, i32) {
    %c0_i32 = arith.constant 0 : i32
    %c0_i32_0 = arith.constant 0 : i32
    %c0_i32_1 = arith.constant 0 : i32
    return %c0_i32, %c0_i32_0 : i32, i32
  }
  func.func @transform_3(%arg0: i32) -> (i32, i32) {
    %c0_i32 = arith.constant 0 : i32
    %c0_i32_0 = arith.constant 0 : i32
    return %arg0, %c0_i32 : i32, i32
  }
}

module attributes {stable_mosaic.version = 11 : i64} {
  func.func @_mlp2_kernel(%arg0: i32, %arg1: memref<8x32xf32, #tpu.memory_space<vmem>>, %arg2: memref<32x32xf32, #tpu.memory_space<vmem>>, %arg3: memref<1x32xf32, #tpu.memory_space<vmem>>, %arg4: memref<32x96xf32, #tpu.memory_space<vmem>>, %arg5: memref<1x96xf32, #tpu.memory_space<vmem>>, %arg6: memref<8x96xf32, #tpu.memory_space<vmem>>, %arg7: memref<8x32xf32, #tpu.memory_space<vmem>>) attributes {dimension_semantics = [#tpu.dimension_semantics<parallel>], iteration_bounds = array<i64: 1>, scalar_prefetch = 0 : i64, scratch_operands = 0 : i64, tpu.core_type = #tpu.core_type<tc>, window_params = [{transform_indices = @transform_0, window_bounds = array<i64: 8, 32>}, {pipeline_mode = #tpu.pipeline_mode<synchronous>, transform_indices = @transform_1, window_bounds = array<i64: 32, 32>}, {pipeline_mode = #tpu.pipeline_mode<synchronous>, transform_indices = @transform_2, window_bounds = array<i64: 1, 32>}, {pipeline_mode = #tpu.pipeline_mode<synchronous>, transform_indices = @transform_3, window_bounds = array<i64: 32, 96>}, {pipeline_mode = #tpu.pipeline_mode<synchronous>, transform_indices = @transform_4, window_bounds = array<i64: 1, 96>}, {transform_indices = @transform_5, window_bounds = array<i64: 8, 96>}, {transform_indices = @transform_6, window_bounds = array<i64: 8, 32>}]} {
    %c0 = arith.constant 0 : index
    %c0_0 = arith.constant 0 : index
    %0 = vector.load %arg1[%c0, %c0_0] : memref<8x32xf32, #tpu.memory_space<vmem>>, vector<8x32xf32>
    %1 = arith.truncf %0 : vector<8x32xf32> to vector<8x32xbf16>
    %c0_1 = arith.constant 0 : index
    %c0_2 = arith.constant 0 : index
    %2 = vector.load %arg2[%c0_1, %c0_2] : memref<32x32xf32, #tpu.memory_space<vmem>>, vector<32x32xf32>
    %3 = arith.truncf %2 : vector<32x32xf32> to vector<32x32xbf16>
    %cst = arith.constant dense<0.000000e+00> : vector<8x32xf32>
    %4 = tpu.matmul %1, %3, %cst {dimension_numbers = #tpu.dot_dimension_numbers<[1], [0], [0], [1], [0, 0, 1, 1], [], []>} : vector<8x32xbf16>, vector<32x32xbf16>, vector<8x32xf32> -> vector<8x32xf32>
    %c0_3 = arith.constant 0 : index
    %c0_4 = arith.constant 0 : index
    %5 = vector.load %arg3[%c0_3, %c0_4] : memref<1x32xf32, #tpu.memory_space<vmem>>, vector<1x32xf32>
    %6 = vector.broadcast %5 : vector<1x32xf32> to vector<8x32xf32>
    %7 = arith.addf %4, %6 : vector<8x32xf32>
    %c0_5 = arith.constant 0 : index
    %c0_6 = arith.constant 0 : index
    %8 = vector.load %arg7[%c0_5, %c0_6] : memref<8x32xf32, #tpu.memory_space<vmem>>, vector<8x32xf32>
    tpu.vector_store %arg7[%c0_5, %c0_6], %7 {strides = array<i32>} : memref<8x32xf32, #tpu.memory_space<vmem>>, vector<8x32xf32>,
    %cst_7 = arith.constant 0.000000e+00 : f32
    %9 = vector.broadcast %cst_7 : f32 to vector<8x32xf32>
    %10 = arith.subf %9, %7 : vector<8x32xf32>
    %11 = math.exp %10 : vector<8x32xf32>
    %cst_8 = arith.constant 1.000000e+00 : f32
    %12 = vector.broadcast %cst_8 : f32 to vector<8x32xf32>
    %13 = arith.addf %12, %11 : vector<8x32xf32>
    %cst_9 = arith.constant 1.000000e+00 : f32
    %14 = vector.broadcast %cst_9 : f32 to vector<8x32xf32>
    %15 = arith.divf %14, %13 : vector<8x32xf32>
    %16 = arith.mulf %7, %15 : vector<8x32xf32>
    %17 = arith.truncf %16 : vector<8x32xf32> to vector<8x32xbf16>
    %c0_10 = arith.constant 0 : index
    %c0_11 = arith.constant 0 : index
    %18 = vector.load %arg4[%c0_10, %c0_11] : memref<32x96xf32, #tpu.memory_space<vmem>>, vector<32x96xf32>
    %19 = arith.truncf %18 : vector<32x96xf32> to vector<32x96xbf16>
    %cst_12 = arith.constant dense<0.000000e+00> : vector<8x96xf32>
    %20 = tpu.matmul %17, %19, %cst_12 {dimension_numbers = #tpu.dot_dimension_numbers<[1], [0], [0], [1], [0, 0, 1, 1], [], []>} : vector<8x32xbf16>, vector<32x96xbf16>, vector<8x96xf32> -> vector<8x96xf32>
    %c0_13 = arith.constant 0 : index
    %c0_14 = arith.constant 0 : index
    %21 = vector.load %arg5[%c0_13, %c0_14] : memref<1x96xf32, #tpu.memory_space<vmem>>, vector<1x96xf32>
    %22 = vector.broadcast %21 : vector<1x96xf32> to vector<8x96xf32>
    %23 = arith.addf %20, %22 : vector<8x96xf32>
    %c0_15 = arith.constant 0 : index
    %c0_16 = arith.constant 0 : index
    %24 = vector.load %arg6[%c0_15, %c0_16] : memref<8x96xf32, #tpu.memory_space<vmem>>, vector<8x96xf32>
    tpu.vector_store %arg6[%c0_15, %c0_16], %23 {strides = array<i32>} : memref<8x96xf32, #tpu.memory_space<vmem>>, vector<8x96xf32>,
    return
  }
  func.func @transform_0(%arg0: i32) -> (i32, i32) {
    %c0_i32 = arith.constant 0 : i32
    %c0_i32_0 = arith.constant 0 : i32
    return %arg0, %c0_i32 : i32, i32
  }
  func.func @transform_1(%arg0: i32) -> (i32, i32) {
    %c0_i32 = arith.constant 0 : i32
    %c0_i32_0 = arith.constant 0 : i32
    %c0_i32_1 = arith.constant 0 : i32
    return %c0_i32, %c0_i32_0 : i32, i32
  }
  func.func @transform_2(%arg0: i32) -> (i32, i32) {
    %c0_i32 = arith.constant 0 : i32
    %c0_i32_0 = arith.constant 0 : i32
    %c0_i32_1 = arith.constant 0 : i32
    return %c0_i32, %c0_i32_0 : i32, i32
  }
  func.func @transform_3(%arg0: i32) -> (i32, i32) {
    %c0_i32 = arith.constant 0 : i32
    %c0_i32_0 = arith.constant 0 : i32
    %c0_i32_1 = arith.constant 0 : i32
    return %c0_i32, %c0_i32_0 : i32, i32
  }
  func.func @transform_4(%arg0: i32) -> (i32, i32) {
    %c0_i32 = arith.constant 0 : i32
    %c0_i32_0 = arith.constant 0 : i32
    %c0_i32_1 = arith.constant 0 : i32
    return %c0_i32, %c0_i32_0 : i32, i32
  }
  func.func @transform_5(%arg0: i32) -> (i32, i32) {
    %c0_i32 = arith.constant 0 : i32
    %c0_i32_0 = arith.constant 0 : i32
    return %arg0, %c0_i32 : i32, i32
  }
  func.func @transform_6(%arg0: i32) -> (i32, i32) {
    %c0_i32 = arith.constant 0 : i32
    %c0_i32_0 = arith.constant 0 : i32
    return %arg0, %c0_i32 : i32, i32
  }
}

module attributes {stable_mosaic.version = 11 : i64} {
  func.func @_linear_scale_kernel(%arg0: i32, %arg1: memref<104x16xf32, #tpu.memory_space<vmem>>, %arg2: memref<16x96xf32, #tpu.memory_space<vmem>>, %arg3: memref<1x96xf32, #tpu.memory_space<vmem>>, %arg4: memref<104x1xf32, #tpu.memory_space<vmem>>, %arg5: memref<104x96xf32, #tpu.memory_space<vmem>>, %arg6: memref<104x96xf32, #tpu.memory_space<vmem>>) attributes {dimension_semantics = [#tpu.dimension_semantics<parallel>], iteration_bounds = array<i64: 1>, scalar_prefetch = 0 : i64, scratch_operands = 0 : i64, tpu.core_type = #tpu.core_type<tc>, window_params = [{transform_indices = @transform_0, window_bounds = array<i64: 104, 16>}, {pipeline_mode = #tpu.pipeline_mode<synchronous>, transform_indices = @transform_1, window_bounds = array<i64: 16, 96>}, {pipeline_mode = #tpu.pipeline_mode<synchronous>, transform_indices = @transform_2, window_bounds = array<i64: 1, 96>}, {transform_indices = @transform_3, window_bounds = array<i64: 104, 1>}, {transform_indices = @transform_4, window_bounds = array<i64: 104, 96>}, {transform_indices = @transform_5, window_bounds = array<i64: 104, 96>}]} {
    %c0 = arith.constant 0 : index
    %c0_0 = arith.constant 0 : index
    %0 = vector.load %arg1[%c0, %c0_0] : memref<104x16xf32, #tpu.memory_space<vmem>>, vector<104x16xf32>
    %1 = arith.truncf %0 : vector<104x16xf32> to vector<104x16xbf16>
    %c0_1 = arith.constant 0 : index
    %c0_2 = arith.constant 0 : index
    %2 = vector.load %arg2[%c0_1, %c0_2] : memref<16x96xf32, #tpu.memory_space<vmem>>, vector<16x96xf32>
    %3 = arith.truncf %2 : vector<16x96xf32> to vector<16x96xbf16>
    %cst = arith.constant dense<0.000000e+00> : vector<104x96xf32>
    %4 = tpu.matmul %1, %3, %cst {dimension_numbers = #tpu.dot_dimension_numbers<[1], [0], [0], [1], [0, 0, 1, 1], [], []>} : vector<104x16xbf16>, vector<16x96xbf16>, vector<104x96xf32> -> vector<104x96xf32>
    %c0_3 = arith.constant 0 : index
    %c0_4 = arith.constant 0 : index
    %5 = vector.load %arg3[%c0_3, %c0_4] : memref<1x96xf32, #tpu.memory_space<vmem>>, vector<1x96xf32>
    %6 = vector.broadcast %5 : vector<1x96xf32> to vector<104x96xf32>
    %7 = arith.addf %4, %6 : vector<104x96xf32>
    %c0_5 = arith.constant 0 : index
    %c0_6 = arith.constant 0 : index
    %8 = vector.load %arg6[%c0_5, %c0_6] : memref<104x96xf32, #tpu.memory_space<vmem>>, vector<104x96xf32>
    tpu.vector_store %arg6[%c0_5, %c0_6], %7 {strides = array<i32>} : memref<104x96xf32, #tpu.memory_space<vmem>>, vector<104x96xf32>,
    %c0_7 = arith.constant 0 : index
    %c0_8 = arith.constant 0 : index
    %9 = vector.load %arg4[%c0_7, %c0_8] : memref<104x1xf32, #tpu.memory_space<vmem>>, vector<104x1xf32>
    %10 = vector.broadcast %9 : vector<104x1xf32> to vector<104x96xf32>
    %11 = arith.mulf %7, %10 : vector<104x96xf32>
    %c0_9 = arith.constant 0 : index
    %c0_10 = arith.constant 0 : index
    %12 = vector.load %arg5[%c0_9, %c0_10] : memref<104x96xf32, #tpu.memory_space<vmem>>, vector<104x96xf32>
    tpu.vector_store %arg5[%c0_9, %c0_10], %11 {strides = array<i32>} : memref<104x96xf32, #tpu.memory_space<vmem>>, vector<104x96xf32>,
    return
  }
  func.func @transform_0(%arg0: i32) -> (i32, i32) {
    %c0_i32 = arith.constant 0 : i32
    %c0_i32_0 = arith.constant 0 : i32
    return %arg0, %c0_i32 : i32, i32
  }
  func.func @transform_1(%arg0: i32) -> (i32, i32) {
    %c0_i32 = arith.constant 0 : i32
    %c0_i32_0 = arith.constant 0 : i32
    %c0_i32_1 = arith.constant 0 : i32
    return %c0_i32, %c0_i32_0 : i32, i32
  }
  func.func @transform_2(%arg0: i32) -> (i32, i32) {
    %c0_i32 = arith.constant 0 : i32
    %c0_i32_0 = arith.constant 0 : i32
    %c0_i32_1 = arith.constant 0 : i32
    return %c0_i32, %c0_i32_0 : i32, i32
  }
  func.func @transform_3(%arg0: i32) -> (i32, i32) {
    %c0_i32 = arith.constant 0 : i32
    %c0_i32_0 = arith.constant 0 : i32
    return %arg0, %c0_i32 : i32, i32
  }
  func.func @transform_4(%arg0: i32) -> (i32, i32) {
    %c0_i32 = arith.constant 0 : i32
    %c0_i32_0 = arith.constant 0 : i32
    return %arg0, %c0_i32 : i32, i32
  }
  func.func @transform_5(%arg0: i32) -> (i32, i32) {
    %c0_i32 = arith.constant 0 : i32
    %c0_i32_0 = arith.constant 0 : i32
    return %arg0, %c0_i32 : i32, i32
  }
}

module attributes {stable_mosaic.version = 11 : i64} {
  func.func @_matmul_kernel(%arg0: i32, %arg1: memref<24x32xf32, #tpu.memory_space<vmem>>, %arg2: memref<32x64xf32, #tpu.memory_space<vmem>>, %arg3: memref<24x64xf32, #tpu.memory_space<vmem>>) attributes {dimension_semantics = [#tpu.dimension_semantics<parallel>], iteration_bounds = array<i64: 1>, scalar_prefetch = 0 : i64, scratch_operands = 0 : i64, tpu.core_type = #tpu.core_type<tc>, window_params = [{transform_indices = @transform_0, window_bounds = array<i64: 24, 32>}, {pipeline_mode = #tpu.pipeline_mode<synchronous>, transform_indices = @transform_1, window_bounds = array<i64: 32, 64>}, {transform_indices = @transform_2, window_bounds = array<i64: 24, 64>}]} {
    %c0 = arith.constant 0 : index
    %c0_0 = arith.constant 0 : index
    %0 = vector.load %arg1[%c0, %c0_0] : memref<24x32xf32, #tpu.memory_space<vmem>>, vector<24x32xf32>
    %1 = arith.truncf %0 : vector<24x32xf32> to vector<24x32xbf16>
    %c0_1 = arith.constant 0 : index
    %c0_2 = arith.constant 0 : index
    %2 = vector.load %arg2[%c0_1, %c0_2] : memref<32x64xf32, #tpu.memory_space<vmem>>, vector<32x64xf32>
    %3 = arith.truncf %2 : vector<32x64xf32> to vector<32x64xbf16>
    %cst = arith.constant dense<0.000000e+00> : vector<24x64xf32>
    %4 = tpu.matmul %1, %3, %cst {dimension_numbers = #tpu.dot_dimension_numbers<[1], [0], [0], [1], [0, 0, 1, 1], [], []>} : vector<24x32xbf16>, vector<32x64xbf16>, vector<24x64xf32> -> vector<24x64xf32>
    %c0_3 = arith.constant 0 : index
    %c0_4 = arith.constant 0 : index
    %5 = vector.load %arg3[%c0_3, %c0_4] : memref<24x64xf32, #tpu.memory_space<vmem>>, vector<24x64xf32>
    tpu.vector_store %arg3[%c0_3, %c0_4], %4 {strides = array<i32>} : memref<24x64xf32, #tpu.memory_space<vmem>>, vector<24x64xf32>,
    return
  }
  func.func @transform_0(%arg0: i32) -> (i32, i32) {
    %c0_i32 = arith.constant 0 : i32
    %c0_i32_0 = arith.constant 0 : i32
    return %arg0, %c0_i32 : i32, i32
  }
  func.func @transform_1(%arg0: i32) -> (i32, i32) {
    %c0_i32 = arith.constant 0 : i32
    %c0_i32_0 = arith.constant 0 : i32
    %c0_i32_1 = arith.constant 0 : i32
    return %c0_i32, %c0_i32_0 : i32, i32
  }
  func.func @transform_2(%arg0: i32) -> (i32, i32) {
    %c0_i32 = arith.constant 0 : i32
    %c0_i32_0 = arith.constant 0 : i32
    return %arg0, %c0_i32 : i32, i32
  }
}

module attributes {stable_mosaic.version = 11 : i64} {
  func.func @_mlp2_kernel(%arg0: i32, %arg1: memref<8x64xf32, #tpu.memory_space<vmem>>, %arg2: memref<64x32xf32, #tpu.memory_space<vmem>>, %arg3: memref<1x32xf32, #tpu.memory_space<vmem>>, %arg4: memref<32x96xf32, #tpu.memory_space<vmem>>, %arg5: memref<1x96xf32, #tpu.memory_space<vmem>>, %arg6: memref<8x96xf32, #tpu.memory_space<vmem>>, %arg7: memref<8x32xf32, #tpu.memory_space<vmem>>) attributes {dimension_semantics = [#tpu.dimension_semantics<parallel>], iteration_bounds = array<i64: 1>, scalar_prefetch = 0 : i64, scratch_operands = 0 : i64, tpu.core_type = #tpu.core_type<tc>, window_params = [{transform_indices = @transform_0, window_bounds = array<i64: 8, 64>}, {pipeline_mode = #tpu.pipeline_mode<synchronous>, transform_indices = @transform_1, window_bounds = array<i64: 64, 32>}, {pipeline_mode = #tpu.pipeline_mode<synchronous>, transform_indices = @transform_2, window_bounds = array<i64: 1, 32>}, {pipeline_mode = #tpu.pipeline_mode<synchronous>, transform_indices = @transform_3, window_bounds = array<i64: 32, 96>}, {pipeline_mode = #tpu.pipeline_mode<synchronous>, transform_indices = @transform_4, window_bounds = array<i64: 1, 96>}, {transform_indices = @transform_5, window_bounds = array<i64: 8, 96>}, {transform_indices = @transform_6, window_bounds = array<i64: 8, 32>}]} {
    %c0 = arith.constant 0 : index
    %c0_0 = arith.constant 0 : index
    %0 = vector.load %arg1[%c0, %c0_0] : memref<8x64xf32, #tpu.memory_space<vmem>>, vector<8x64xf32>
    %1 = arith.truncf %0 : vector<8x64xf32> to vector<8x64xbf16>
    %c0_1 = arith.constant 0 : index
    %c0_2 = arith.constant 0 : index
    %2 = vector.load %arg2[%c0_1, %c0_2] : memref<64x32xf32, #tpu.memory_space<vmem>>, vector<64x32xf32>
    %3 = arith.truncf %2 : vector<64x32xf32> to vector<64x32xbf16>
    %cst = arith.constant dense<0.000000e+00> : vector<8x32xf32>
    %4 = tpu.matmul %1, %3, %cst {dimension_numbers = #tpu.dot_dimension_numbers<[1], [0], [0], [1], [0, 0, 1, 1], [], []>} : vector<8x64xbf16>, vector<64x32xbf16>, vector<8x32xf32> -> vector<8x32xf32>
    %c0_3 = arith.constant 0 : index
    %c0_4 = arith.constant 0 : index
    %5 = vector.load %arg3[%c0_3, %c0_4] : memref<1x32xf32, #tpu.memory_space<vmem>>, vector<1x32xf32>
    %6 = vector.broadcast %5 : vector<1x32xf32> to vector<8x32xf32>
    %7 = arith.addf %4, %6 : vector<8x32xf32>
    %c0_5 = arith.constant 0 : index
    %c0_6 = arith.constant 0 : index
    %8 = vector.load %arg7[%c0_5, %c0_6] : memref<8x32xf32, #tpu.memory_space<vmem>>, vector<8x32xf32>
    tpu.vector_store %arg7[%c0_5, %c0_6], %7 {strides = array<i32>} : memref<8x32xf32, #tpu.memory_space<vmem>>, vector<8x32xf32>,
    %cst_7 = arith.constant 0.000000e+00 : f32
    %9 = vector.broadcast %cst_7 : f32 to vector<8x32xf32>
    %10 = arith.subf %9, %7 : vector<8x32xf32>
    %11 = math.exp %10 : vector<8x32xf32>
    %cst_8 = arith.constant 1.000000e+00 : f32
    %12 = vector.broadcast %cst_8 : f32 to vector<8x32xf32>
    %13 = arith.addf %12, %11 : vector<8x32xf32>
    %cst_9 = arith.constant 1.000000e+00 : f32
    %14 = vector.broadcast %cst_9 : f32 to vector<8x32xf32>
    %15 = arith.divf %14, %13 : vector<8x32xf32>
    %16 = arith.mulf %7, %15 : vector<8x32xf32>
    %17 = arith.truncf %16 : vector<8x32xf32> to vector<8x32xbf16>
    %c0_10 = arith.constant 0 : index
    %c0_11 = arith.constant 0 : index
    %18 = vector.load %arg4[%c0_10, %c0_11] : memref<32x96xf32, #tpu.memory_space<vmem>>, vector<32x96xf32>
    %19 = arith.truncf %18 : vector<32x96xf32> to vector<32x96xbf16>
    %cst_12 = arith.constant dense<0.000000e+00> : vector<8x96xf32>
    %20 = tpu.matmul %17, %19, %cst_12 {dimension_numbers = #tpu.dot_dimension_numbers<[1], [0], [0], [1], [0, 0, 1, 1], [], []>} : vector<8x32xbf16>, vector<32x96xbf16>, vector<8x96xf32> -> vector<8x96xf32>
    %c0_13 = arith.constant 0 : index
    %c0_14 = arith.constant 0 : index
    %21 = vector.load %arg5[%c0_13, %c0_14] : memref<1x96xf32, #tpu.memory_space<vmem>>, vector<1x96xf32>
    %22 = vector.broadcast %21 : vector<1x96xf32> to vector<8x96xf32>
    %23 = arith.addf %20, %22 : vector<8x96xf32>
    %c0_15 = arith.constant 0 : index
    %c0_16 = arith.constant 0 : index
    %24 = vector.load %arg6[%c0_15, %c0_16] : memref<8x96xf32, #tpu.memory_space<vmem>>, vector<8x96xf32>
    tpu.vector_store %arg6[%c0_15, %c0_16], %23 {strides = array<i32>} : memref<8x96xf32, #tpu.memory_space<vmem>>, vector<8x96xf32>,
    return
  }
  func.func @transform_0(%arg0: i32) -> (i32, i32) {
    %c0_i32 = arith.constant 0 : i32
    %c0_i32_0 = arith.constant 0 : i32
    return %arg0, %c0_i32 : i32, i32
  }
  func.func @transform_1(%arg0: i32) -> (i32, i32) {
    %c0_i32 = arith.constant 0 : i32
    %c0_i32_0 = arith.constant 0 : i32
    %c0_i32_1 = arith.constant 0 : i32
    return %c0_i32, %c0_i32_0 : i32, i32
  }
  func.func @transform_2(%arg0: i32) -> (i32, i32) {
    %c0_i32 = arith.constant 0 : i32
    %c0_i32_0 = arith.constant 0 : i32
    %c0_i32_1 = arith.constant 0 : i32
    return %c0_i32, %c0_i32_0 : i32, i32
  }
  func.func @transform_3(%arg0: i32) -> (i32, i32) {
    %c0_i32 = arith.constant 0 : i32
    %c0_i32_0 = arith.constant 0 : i32
    %c0_i32_1 = arith.constant 0 : i32
    return %c0_i32, %c0_i32_0 : i32, i32
  }
  func.func @transform_4(%arg0: i32) -> (i32, i32) {
    %c0_i32 = arith.constant 0 : i32
    %c0_i32_0 = arith.constant 0 : i32
    %c0_i32_1 = arith.constant 0 : i32
    return %c0_i32, %c0_i32_0 : i32, i32
  }
  func.func @transform_5(%arg0: i32) -> (i32, i32) {
    %c0_i32 = arith.constant 0 : i32
    %c0_i32_0 = arith.constant 0 : i32
    return %arg0, %c0_i32 : i32, i32
  }
  func.func @transform_6(%arg0: i32) -> (i32, i32) {
    %c0_i32 = arith.constant 0 : i32
    %c0_i32_0 = arith.constant 0 : i32
    return %arg0, %c0_i32 : i32, i32
  }
}

module attributes {stable_mosaic.version = 11 : i64} {
  func.func @_mlp2_kernel(%arg0: i32, %arg1: memref<8x32xf32, #tpu.memory_space<vmem>>, %arg2: memref<32x32xf32, #tpu.memory_space<vmem>>, %arg3: memref<1x32xf32, #tpu.memory_space<vmem>>, %arg4: memref<32x96xf32, #tpu.memory_space<vmem>>, %arg5: memref<1x96xf32, #tpu.memory_space<vmem>>, %arg6: memref<8x96xf32, #tpu.memory_space<vmem>>, %arg7: memref<8x32xf32, #tpu.memory_space<vmem>>) attributes {dimension_semantics = [#tpu.dimension_semantics<parallel>], iteration_bounds = array<i64: 1>, scalar_prefetch = 0 : i64, scratch_operands = 0 : i64, tpu.core_type = #tpu.core_type<tc>, window_params = [{transform_indices = @transform_0, window_bounds = array<i64: 8, 32>}, {pipeline_mode = #tpu.pipeline_mode<synchronous>, transform_indices = @transform_1, window_bounds = array<i64: 32, 32>}, {pipeline_mode = #tpu.pipeline_mode<synchronous>, transform_indices = @transform_2, window_bounds = array<i64: 1, 32>}, {pipeline_mode = #tpu.pipeline_mode<synchronous>, transform_indices = @transform_3, window_bounds = array<i64: 32, 96>}, {pipeline_mode = #tpu.pipeline_mode<synchronous>, transform_indices = @transform_4, window_bounds = array<i64: 1, 96>}, {transform_indices = @transform_5, window_bounds = array<i64: 8, 96>}, {transform_indices = @transform_6, window_bounds = array<i64: 8, 32>}]} {
    %c0 = arith.constant 0 : index
    %c0_0 = arith.constant 0 : index
    %0 = vector.load %arg1[%c0, %c0_0] : memref<8x32xf32, #tpu.memory_space<vmem>>, vector<8x32xf32>
    %1 = arith.truncf %0 : vector<8x32xf32> to vector<8x32xbf16>
    %c0_1 = arith.constant 0 : index
    %c0_2 = arith.constant 0 : index
    %2 = vector.load %arg2[%c0_1, %c0_2] : memref<32x32xf32, #tpu.memory_space<vmem>>, vector<32x32xf32>
    %3 = arith.truncf %2 : vector<32x32xf32> to vector<32x32xbf16>
    %cst = arith.constant dense<0.000000e+00> : vector<8x32xf32>
    %4 = tpu.matmul %1, %3, %cst {dimension_numbers = #tpu.dot_dimension_numbers<[1], [0], [0], [1], [0, 0, 1, 1], [], []>} : vector<8x32xbf16>, vector<32x32xbf16>, vector<8x32xf32> -> vector<8x32xf32>
    %c0_3 = arith.constant 0 : index
    %c0_4 = arith.constant 0 : index
    %5 = vector.load %arg3[%c0_3, %c0_4] : memref<1x32xf32, #tpu.memory_space<vmem>>, vector<1x32xf32>
    %6 = vector.broadcast %5 : vector<1x32xf32> to vector<8x32xf32>
    %7 = arith.addf %4, %6 : vector<8x32xf32>
    %c0_5 = arith.constant 0 : index
    %c0_6 = arith.constant 0 : index
    %8 = vector.load %arg7[%c0_5, %c0_6] : memref<8x32xf32, #tpu.memory_space<vmem>>, vector<8x32xf32>
    tpu.vector_store %arg7[%c0_5, %c0_6], %7 {strides = array<i32>} : memref<8x32xf32, #tpu.memory_space<vmem>>, vector<8x32xf32>,
    %cst_7 = arith.constant 0.000000e+00 : f32
    %9 = vector.broadcast %cst_7 : f32 to vector<8x32xf32>
    %10 = arith.subf %9, %7 : vector<8x32xf32>
    %11 = math.exp %10 : vector<8x32xf32>
    %cst_8 = arith.constant 1.000000e+00 : f32
    %12 = vector.broadcast %cst_8 : f32 to vector<8x32xf32>
    %13 = arith.addf %12, %11 : vector<8x32xf32>
    %cst_9 = arith.constant 1.000000e+00 : f32
    %14 = vector.broadcast %cst_9 : f32 to vector<8x32xf32>
    %15 = arith.divf %14, %13 : vector<8x32xf32>
    %16 = arith.mulf %7, %15 : vector<8x32xf32>
    %17 = arith.truncf %16 : vector<8x32xf32> to vector<8x32xbf16>
    %c0_10 = arith.constant 0 : index
    %c0_11 = arith.constant 0 : index
    %18 = vector.load %arg4[%c0_10, %c0_11] : memref<32x96xf32, #tpu.memory_space<vmem>>, vector<32x96xf32>
    %19 = arith.truncf %18 : vector<32x96xf32> to vector<32x96xbf16>
    %cst_12 = arith.constant dense<0.000000e+00> : vector<8x96xf32>
    %20 = tpu.matmul %17, %19, %cst_12 {dimension_numbers = #tpu.dot_dimension_numbers<[1], [0], [0], [1], [0, 0, 1, 1], [], []>} : vector<8x32xbf16>, vector<32x96xbf16>, vector<8x96xf32> -> vector<8x96xf32>
    %c0_13 = arith.constant 0 : index
    %c0_14 = arith.constant 0 : index
    %21 = vector.load %arg5[%c0_13, %c0_14] : memref<1x96xf32, #tpu.memory_space<vmem>>, vector<1x96xf32>
    %22 = vector.broadcast %21 : vector<1x96xf32> to vector<8x96xf32>
    %23 = arith.addf %20, %22 : vector<8x96xf32>
    %c0_15 = arith.constant 0 : index
    %c0_16 = arith.constant 0 : index
    %24 = vector.load %arg6[%c0_15, %c0_16] : memref<8x96xf32, #tpu.memory_space<vmem>>, vector<8x96xf32>
    tpu.vector_store %arg6[%c0_15, %c0_16], %23 {strides = array<i32>} : memref<8x96xf32, #tpu.memory_space<vmem>>, vector<8x96xf32>,
    return
  }
  func.func @transform_0(%arg0: i32) -> (i32, i32) {
    %c0_i32 = arith.constant 0 : i32
    %c0_i32_0 = arith.constant 0 : i32
    return %arg0, %c0_i32 : i32, i32
  }
  func.func @transform_1(%arg0: i32) -> (i32, i32) {
    %c0_i32 = arith.constant 0 : i32
    %c0_i32_0 = arith.constant 0 : i32
    %c0_i32_1 = arith.constant 0 : i32
    return %c0_i32, %c0_i32_0 : i32, i32
  }
  func.func @transform_2(%arg0: i32) -> (i32, i32) {
    %c0_i32 = arith.constant 0 : i32
    %c0_i32_0 = arith.constant 0 : i32
    %c0_i32_1 = arith.constant 0 : i32
    return %c0_i32, %c0_i32_0 : i32, i32
  }
  func.func @transform_3(%arg0: i32) -> (i32, i32) {
    %c0_i32 = arith.constant 0 : i32
    %c0_i32_0 = arith.constant 0 : i32
    %c0_i32_1 = arith.constant 0 : i32
    return %c0_i32, %c0_i32_0 : i32, i32
  }
  func.func @transform_4(%arg0: i32) -> (i32, i32) {
    %c0_i32 = arith.constant 0 : i32
    %c0_i32_0 = arith.constant 0 : i32
    %c0_i32_1 = arith.constant 0 : i32
    return %c0_i32, %c0_i32_0 : i32, i32
  }
  func.func @transform_5(%arg0: i32) -> (i32, i32) {
    %c0_i32 = arith.constant 0 : i32
    %c0_i32_0 = arith.constant 0 : i32
    return %arg0, %c0_i32 : i32, i32
  }
  func.func @transform_6(%arg0: i32) -> (i32, i32) {
    %c0_i32 = arith.constant 0 : i32
    %c0_i32_0 = arith.constant 0 : i32
    return %arg0, %c0_i32 : i32, i32
  }
}

module attributes {stable_mosaic.version = 11 : i64} {
  func.func @_out_head_kernel(%arg0: i32, %arg1: memref<8x32xf32, #tpu.memory_space<vmem>>, %arg2: memref<32x16xf32, #tpu.memory_space<vmem>>, %arg3: memref<1x16xf32, #tpu.memory_space<vmem>>, %arg4: memref<1x16xf32, #tpu.memory_space<vmem>>, %arg5: memref<1x1xf32, #tpu.memory_space<vmem>>, %arg6: memref<1x1xf32, #tpu.memory_space<vmem>>, %arg7: memref<8x16xf32, #tpu.memory_space<vmem>>) attributes {dimension_semantics = [#tpu.dimension_semantics<parallel>], iteration_bounds = array<i64: 1>, scalar_prefetch = 0 : i64, scratch_operands = 0 : i64, tpu.core_type = #tpu.core_type<tc>, window_params = [{pipeline_mode = #tpu.pipeline_mode<synchronous>, transform_indices = @transform_0, window_bounds = array<i64: 8, 32>}, {pipeline_mode = #tpu.pipeline_mode<synchronous>, transform_indices = @transform_1, window_bounds = array<i64: 32, 16>}, {pipeline_mode = #tpu.pipeline_mode<synchronous>, transform_indices = @transform_2, window_bounds = array<i64: 1, 16>}, {pipeline_mode = #tpu.pipeline_mode<synchronous>, transform_indices = @transform_3, window_bounds = array<i64: 1, 16>}, {pipeline_mode = #tpu.pipeline_mode<synchronous>, transform_indices = @transform_4, window_bounds = array<i64: 1, 1>}, {pipeline_mode = #tpu.pipeline_mode<synchronous>, transform_indices = @transform_5, window_bounds = array<i64: 1, 1>}, {pipeline_mode = #tpu.pipeline_mode<synchronous>, transform_indices = @transform_6, window_bounds = array<i64: 8, 16>}]} {
    %c0 = arith.constant 0 : index
    %c0_0 = arith.constant 0 : index
    %0 = vector.load %arg1[%c0, %c0_0] : memref<8x32xf32, #tpu.memory_space<vmem>>, vector<8x32xf32>
    %1 = arith.truncf %0 : vector<8x32xf32> to vector<8x32xbf16>
    %c0_1 = arith.constant 0 : index
    %c0_2 = arith.constant 0 : index
    %2 = vector.load %arg2[%c0_1, %c0_2] : memref<32x16xf32, #tpu.memory_space<vmem>>, vector<32x16xf32>
    %3 = arith.truncf %2 : vector<32x16xf32> to vector<32x16xbf16>
    %cst = arith.constant dense<0.000000e+00> : vector<8x16xf32>
    %4 = tpu.matmul %1, %3, %cst {dimension_numbers = #tpu.dot_dimension_numbers<[1], [0], [0], [1], [0, 0, 1, 1], [], []>} : vector<8x32xbf16>, vector<32x16xbf16>, vector<8x16xf32> -> vector<8x16xf32>
    %c0_3 = arith.constant 0 : index
    %c0_4 = arith.constant 0 : index
    %5 = vector.load %arg3[%c0_3, %c0_4] : memref<1x16xf32, #tpu.memory_space<vmem>>, vector<1x16xf32>
    %6 = vector.broadcast %5 : vector<1x16xf32> to vector<8x16xf32>
    %7 = arith.addf %4, %6 : vector<8x16xf32>
    %c0_5 = arith.constant 0 : index
    %c0_6 = arith.constant 0 : index
    %8 = vector.load %arg7[%c0_5, %c0_6] : memref<8x16xf32, #tpu.memory_space<vmem>>, vector<8x16xf32>
    tpu.vector_store %arg7[%c0_5, %c0_6], %7 {strides = array<i32>} : memref<8x16xf32, #tpu.memory_space<vmem>>, vector<8x16xf32>,
    %cst_7 = arith.constant 0.000000e+00 : f32
    %9 = vector.broadcast %cst_7 : f32 to vector<8x16xf32>
    %10 = arith.subf %9, %7 : vector<8x16xf32>
    %11 = math.exp %10 : vector<8x16xf32>
    %cst_8 = arith.constant 1.000000e+00 : f32
    %12 = vector.broadcast %cst_8 : f32 to vector<8x16xf32>
    %13 = arith.addf %12, %11 : vector<8x16xf32>
    %cst_9 = arith.constant 1.000000e+00 : f32
    %14 = vector.broadcast %cst_9 : f32 to vector<8x16xf32>
    %15 = arith.divf %14, %13 : vector<8x16xf32>
    %16 = arith.mulf %7, %15 : vector<8x16xf32>
    %c0_10 = arith.constant 0 : index
    %c0_11 = arith.constant 0 : index
    %17 = vector.load %arg4[%c0_10, %c0_11] : memref<1x16xf32, #tpu.memory_space<vmem>>, vector<1x16xf32>
    %18 = vector.broadcast %17 : vector<1x16xf32> to vector<8x16xf32>
    %19 = arith.mulf %16, %18 : vector<8x16xf32>
    %cst_12 = arith.constant dense<0.000000e+00> : vector<8xf32>
    %20 = vector.multi_reduction <add>, %19, %cst_12 [1] : vector<8x16xf32> to vector<8xf32>
    %21 = vector.shape_cast %20 : vector<8xf32> to vector<8x1xf32>
    %cst_13 = arith.constant dense<0.000000e+00> : vector<1xf32>
    %22 = vector.multi_reduction <add>, %21, %cst_13 [0] : vector<8x1xf32> to vector<1xf32>
    %23 = vector.shape_cast %22 : vector<1xf32> to vector<1x1xf32>
    %c0_14 = arith.constant 0 : index
    %c0_15 = arith.constant 0 : index
    %24 = vector.load %arg5[%c0_14, %c0_15] : memref<1x1xf32, #tpu.memory_space<vmem>>, vector<1x1xf32>
    %cst_16 = arith.constant 8.000000e+00 : f32
    %25 = vector.broadcast %cst_16 : f32 to vector<1x1xf32>
    %26 = arith.mulf %24, %25 : vector<1x1xf32>
    %27 = arith.addf %23, %26 : vector<1x1xf32>
    %c0_17 = arith.constant 0 : index
    %c0_18 = arith.constant 0 : index
    %28 = vector.load %arg6[%c0_17, %c0_18] : memref<1x1xf32, #tpu.memory_space<vmem>>, vector<1x1xf32>
    tpu.vector_store %arg6[%c0_17, %c0_18], %27 {strides = array<i32>} : memref<1x1xf32, #tpu.memory_space<vmem>>, vector<1x1xf32>,
    return
  }
  func.func @transform_0(%arg0: i32) -> (i32, i32) {
    %c0_i32 = arith.constant 0 : i32
    %c0_i32_0 = arith.constant 0 : i32
    %c0_i32_1 = arith.constant 0 : i32
    return %c0_i32, %c0_i32_0 : i32, i32
  }
  func.func @transform_1(%arg0: i32) -> (i32, i32) {
    %c0_i32 = arith.constant 0 : i32
    %c0_i32_0 = arith.constant 0 : i32
    %c0_i32_1 = arith.constant 0 : i32
    return %c0_i32, %c0_i32_0 : i32, i32
  }
  func.func @transform_2(%arg0: i32) -> (i32, i32) {
    %c0_i32 = arith.constant 0 : i32
    %c0_i32_0 = arith.constant 0 : i32
    %c0_i32_1 = arith.constant 0 : i32
    return %c0_i32, %c0_i32_0 : i32, i32
  }
  func.func @transform_3(%arg0: i32) -> (i32, i32) {
    %c0_i32 = arith.constant 0 : i32
    %c0_i32_0 = arith.constant 0 : i32
    %c0_i32_1 = arith.constant 0 : i32
    return %c0_i32, %c0_i32_0 : i32, i32
  }
  func.func @transform_4(%arg0: i32) -> (i32, i32) {
    %c0_i32 = arith.constant 0 : i32
    %c0_i32_0 = arith.constant 0 : i32
    %c0_i32_1 = arith.constant 0 : i32
    return %c0_i32, %c0_i32_0 : i32, i32
  }
  func.func @transform_5(%arg0: i32) -> (i32, i32) {
    %c0_i32 = arith.constant 0 : i32
    %c0_i32_0 = arith.constant 0 : i32
    %c0_i32_1 = arith.constant 0 : i32
    return %c0_i32, %c0_i32_0 : i32, i32
  }
  func.func @transform_6(%arg0: i32) -> (i32, i32) {
    %c0_i32 = arith.constant 0 : i32
    %c0_i32_0 = arith.constant 0 : i32
    %c0_i32_1 = arith.constant 0 : i32
    return %c0_i32, %c0_i32_0 : i32, i32
  }
}

module attributes {stable_mosaic.version = 11 : i64} {
  func.func @_dot_nt_kernel(%arg0: i32, %arg1: memref<8x16xf32, #tpu.memory_space<vmem>>, %arg2: memref<32x16xf32, #tpu.memory_space<vmem>>, %arg3: memref<8x32xf32, #tpu.memory_space<vmem>>) attributes {dimension_semantics = [#tpu.dimension_semantics<parallel>], iteration_bounds = array<i64: 1>, scalar_prefetch = 0 : i64, scratch_operands = 0 : i64, tpu.core_type = #tpu.core_type<tc>, window_params = [{transform_indices = @transform_0, window_bounds = array<i64: 8, 16>}, {pipeline_mode = #tpu.pipeline_mode<synchronous>, transform_indices = @transform_1, window_bounds = array<i64: 32, 16>}, {transform_indices = @transform_2, window_bounds = array<i64: 8, 32>}]} {
    %c0 = arith.constant 0 : index
    %c0_0 = arith.constant 0 : index
    %0 = vector.load %arg1[%c0, %c0_0] : memref<8x16xf32, #tpu.memory_space<vmem>>, vector<8x16xf32>
    %1 = arith.truncf %0 : vector<8x16xf32> to vector<8x16xbf16>
    %c0_1 = arith.constant 0 : index
    %c0_2 = arith.constant 0 : index
    %2 = vector.load %arg2[%c0_1, %c0_2] : memref<32x16xf32, #tpu.memory_space<vmem>>, vector<32x16xf32>
    %3 = arith.truncf %2 : vector<32x16xf32> to vector<32x16xbf16>
    %cst = arith.constant dense<0.000000e+00> : vector<8x32xf32>
    %4 = tpu.matmul %1, %3, %cst {dimension_numbers = #tpu.dot_dimension_numbers<[1], [1], [0], [0], [0, 0, 1, 0], [], []>} : vector<8x16xbf16>, vector<32x16xbf16>, vector<8x32xf32> -> vector<8x32xf32>
    %c0_3 = arith.constant 0 : index
    %c0_4 = arith.constant 0 : index
    %5 = vector.load %arg3[%c0_3, %c0_4] : memref<8x32xf32, #tpu.memory_space<vmem>>, vector<8x32xf32>
    tpu.vector_store %arg3[%c0_3, %c0_4], %4 {strides = array<i32>} : memref<8x32xf32, #tpu.memory_space<vmem>>, vector<8x32xf32>,
    return
  }
  func.func @transform_0(%arg0: i32) -> (i32, i32) {
    %c0_i32 = arith.constant 0 : i32
    %c0_i32_0 = arith.constant 0 : i32
    return %arg0, %c0_i32 : i32, i32
  }
  func.func @transform_1(%arg0: i32) -> (i32, i32) {
    %c0_i32 = arith.constant 0 : i32
    %c0_i32_0 = arith.constant 0 : i32
    %c0_i32_1 = arith.constant 0 : i32
    return %c0_i32, %c0_i32_0 : i32, i32
  }
  func.func @transform_2(%arg0: i32) -> (i32, i32) {
    %c0_i32 = arith.constant 0 : i32
    %c0_i32_0 = arith.constant 0 : i32
    return %arg0, %c0_i32 : i32, i32
  }
}

module attributes {stable_mosaic.version = 11 : i64} {
  func.func @_dot_nt_kernel(%arg0: i32, %arg1: memref<8x96xf32, #tpu.memory_space<vmem>>, %arg2: memref<32x96xf32, #tpu.memory_space<vmem>>, %arg3: memref<8x32xf32, #tpu.memory_space<vmem>>) attributes {dimension_semantics = [#tpu.dimension_semantics<parallel>], iteration_bounds = array<i64: 1>, scalar_prefetch = 0 : i64, scratch_operands = 0 : i64, tpu.core_type = #tpu.core_type<tc>, window_params = [{transform_indices = @transform_0, window_bounds = array<i64: 8, 96>}, {pipeline_mode = #tpu.pipeline_mode<synchronous>, transform_indices = @transform_1, window_bounds = array<i64: 32, 96>}, {transform_indices = @transform_2, window_bounds = array<i64: 8, 32>}]} {
    %c0 = arith.constant 0 : index
    %c0_0 = arith.constant 0 : index
    %0 = vector.load %arg1[%c0, %c0_0] : memref<8x96xf32, #tpu.memory_space<vmem>>, vector<8x96xf32>
    %1 = arith.truncf %0 : vector<8x96xf32> to vector<8x96xbf16>
    %c0_1 = arith.constant 0 : index
    %c0_2 = arith.constant 0 : index
    %2 = vector.load %arg2[%c0_1, %c0_2] : memref<32x96xf32, #tpu.memory_space<vmem>>, vector<32x96xf32>
    %3 = arith.truncf %2 : vector<32x96xf32> to vector<32x96xbf16>
    %cst = arith.constant dense<0.000000e+00> : vector<8x32xf32>
    %4 = tpu.matmul %1, %3, %cst {dimension_numbers = #tpu.dot_dimension_numbers<[1], [1], [0], [0], [0, 0, 1, 0], [], []>} : vector<8x96xbf16>, vector<32x96xbf16>, vector<8x32xf32> -> vector<8x32xf32>
    %c0_3 = arith.constant 0 : index
    %c0_4 = arith.constant 0 : index
    %5 = vector.load %arg3[%c0_3, %c0_4] : memref<8x32xf32, #tpu.memory_space<vmem>>, vector<8x32xf32>
    tpu.vector_store %arg3[%c0_3, %c0_4], %4 {strides = array<i32>} : memref<8x32xf32, #tpu.memory_space<vmem>>, vector<8x32xf32>,
    return
  }
  func.func @transform_0(%arg0: i32) -> (i32, i32) {
    %c0_i32 = arith.constant 0 : i32
    %c0_i32_0 = arith.constant 0 : i32
    return %arg0, %c0_i32 : i32, i32
  }
  func.func @transform_1(%arg0: i32) -> (i32, i32) {
    %c0_i32 = arith.constant 0 : i32
    %c0_i32_0 = arith.constant 0 : i32
    %c0_i32_1 = arith.constant 0 : i32
    return %c0_i32, %c0_i32_0 : i32, i32
  }
  func.func @transform_2(%arg0: i32) -> (i32, i32) {
    %c0_i32 = arith.constant 0 : i32
    %c0_i32_0 = arith.constant 0 : i32
    return %arg0, %c0_i32 : i32, i32
  }
}

module attributes {stable_mosaic.version = 11 : i64} {
  func.func @_dot_nt_kernel(%arg0: i32, %arg1: memref<8x32xf32, #tpu.memory_space<vmem>>, %arg2: memref<64x32xf32, #tpu.memory_space<vmem>>, %arg3: memref<8x64xf32, #tpu.memory_space<vmem>>) attributes {dimension_semantics = [#tpu.dimension_semantics<parallel>], iteration_bounds = array<i64: 1>, scalar_prefetch = 0 : i64, scratch_operands = 0 : i64, tpu.core_type = #tpu.core_type<tc>, window_params = [{transform_indices = @transform_0, window_bounds = array<i64: 8, 32>}, {pipeline_mode = #tpu.pipeline_mode<synchronous>, transform_indices = @transform_1, window_bounds = array<i64: 64, 32>}, {transform_indices = @transform_2, window_bounds = array<i64: 8, 64>}]} {
    %c0 = arith.constant 0 : index
    %c0_0 = arith.constant 0 : index
    %0 = vector.load %arg1[%c0, %c0_0] : memref<8x32xf32, #tpu.memory_space<vmem>>, vector<8x32xf32>
    %1 = arith.truncf %0 : vector<8x32xf32> to vector<8x32xbf16>
    %c0_1 = arith.constant 0 : index
    %c0_2 = arith.constant 0 : index
    %2 = vector.load %arg2[%c0_1, %c0_2] : memref<64x32xf32, #tpu.memory_space<vmem>>, vector<64x32xf32>
    %3 = arith.truncf %2 : vector<64x32xf32> to vector<64x32xbf16>
    %cst = arith.constant dense<0.000000e+00> : vector<8x64xf32>
    %4 = tpu.matmul %1, %3, %cst {dimension_numbers = #tpu.dot_dimension_numbers<[1], [1], [0], [0], [0, 0, 1, 0], [], []>} : vector<8x32xbf16>, vector<64x32xbf16>, vector<8x64xf32> -> vector<8x64xf32>
    %c0_3 = arith.constant 0 : index
    %c0_4 = arith.constant 0 : index
    %5 = vector.load %arg3[%c0_3, %c0_4] : memref<8x64xf32, #tpu.memory_space<vmem>>, vector<8x64xf32>
    tpu.vector_store %arg3[%c0_3, %c0_4], %4 {strides = array<i32>} : memref<8x64xf32, #tpu.memory_space<vmem>>, vector<8x64xf32>,
    return
  }
  func.func @transform_0(%arg0: i32) -> (i32, i32) {
    %c0_i32 = arith.constant 0 : i32
    %c0_i32_0 = arith.constant 0 : i32
    return %arg0, %c0_i32 : i32, i32
  }
  func.func @transform_1(%arg0: i32) -> (i32, i32) {
    %c0_i32 = arith.constant 0 : i32
    %c0_i32_0 = arith.constant 0 : i32
    %c0_i32_1 = arith.constant 0 : i32
    return %c0_i32, %c0_i32_0 : i32, i32
  }
  func.func @transform_2(%arg0: i32) -> (i32, i32) {
    %c0_i32 = arith.constant 0 : i32
    %c0_i32_0 = arith.constant 0 : i32
    return %arg0, %c0_i32 : i32, i32
  }
}

module attributes {stable_mosaic.version = 11 : i64} {
  func.func @_dot_nt_kernel(%arg0: i32, %arg1: memref<24x64xf32, #tpu.memory_space<vmem>>, %arg2: memref<32x64xf32, #tpu.memory_space<vmem>>, %arg3: memref<24x32xf32, #tpu.memory_space<vmem>>) attributes {dimension_semantics = [#tpu.dimension_semantics<parallel>], iteration_bounds = array<i64: 1>, scalar_prefetch = 0 : i64, scratch_operands = 0 : i64, tpu.core_type = #tpu.core_type<tc>, window_params = [{transform_indices = @transform_0, window_bounds = array<i64: 24, 64>}, {pipeline_mode = #tpu.pipeline_mode<synchronous>, transform_indices = @transform_1, window_bounds = array<i64: 32, 64>}, {transform_indices = @transform_2, window_bounds = array<i64: 24, 32>}]} {
    %c0 = arith.constant 0 : index
    %c0_0 = arith.constant 0 : index
    %0 = vector.load %arg1[%c0, %c0_0] : memref<24x64xf32, #tpu.memory_space<vmem>>, vector<24x64xf32>
    %1 = arith.truncf %0 : vector<24x64xf32> to vector<24x64xbf16>
    %c0_1 = arith.constant 0 : index
    %c0_2 = arith.constant 0 : index
    %2 = vector.load %arg2[%c0_1, %c0_2] : memref<32x64xf32, #tpu.memory_space<vmem>>, vector<32x64xf32>
    %3 = arith.truncf %2 : vector<32x64xf32> to vector<32x64xbf16>
    %cst = arith.constant dense<0.000000e+00> : vector<24x32xf32>
    %4 = tpu.matmul %1, %3, %cst {dimension_numbers = #tpu.dot_dimension_numbers<[1], [1], [0], [0], [0, 0, 1, 0], [], []>} : vector<24x64xbf16>, vector<32x64xbf16>, vector<24x32xf32> -> vector<24x32xf32>
    %c0_3 = arith.constant 0 : index
    %c0_4 = arith.constant 0 : index
    %5 = vector.load %arg3[%c0_3, %c0_4] : memref<24x32xf32, #tpu.memory_space<vmem>>, vector<24x32xf32>
    tpu.vector_store %arg3[%c0_3, %c0_4], %4 {strides = array<i32>} : memref<24x32xf32, #tpu.memory_space<vmem>>, vector<24x32xf32>,
    return
  }
  func.func @transform_0(%arg0: i32) -> (i32, i32) {
    %c0_i32 = arith.constant 0 : i32
    %c0_i32_0 = arith.constant 0 : i32
    return %arg0, %c0_i32 : i32, i32
  }
  func.func @transform_1(%arg0: i32) -> (i32, i32) {
    %c0_i32 = arith.constant 0 : i32
    %c0_i32_0 = arith.constant 0 : i32
    %c0_i32_1 = arith.constant 0 : i32
    return %c0_i32, %c0_i32_0 : i32, i32
  }
  func.func @transform_2(%arg0: i32) -> (i32, i32) {
    %c0_i32 = arith.constant 0 : i32
    %c0_i32_0 = arith.constant 0 : i32
    return %arg0, %c0_i32 : i32, i32
  }
}

module attributes {stable_mosaic.version = 11 : i64} {
  func.func @_dot_nt_kernel(%arg0: i32, %arg1: memref<8x96xf32, #tpu.memory_space<vmem>>, %arg2: memref<32x96xf32, #tpu.memory_space<vmem>>, %arg3: memref<8x32xf32, #tpu.memory_space<vmem>>) attributes {dimension_semantics = [#tpu.dimension_semantics<parallel>], iteration_bounds = array<i64: 1>, scalar_prefetch = 0 : i64, scratch_operands = 0 : i64, tpu.core_type = #tpu.core_type<tc>, window_params = [{transform_indices = @transform_0, window_bounds = array<i64: 8, 96>}, {pipeline_mode = #tpu.pipeline_mode<synchronous>, transform_indices = @transform_1, window_bounds = array<i64: 32, 96>}, {transform_indices = @transform_2, window_bounds = array<i64: 8, 32>}]} {
    %c0 = arith.constant 0 : index
    %c0_0 = arith.constant 0 : index
    %0 = vector.load %arg1[%c0, %c0_0] : memref<8x96xf32, #tpu.memory_space<vmem>>, vector<8x96xf32>
    %1 = arith.truncf %0 : vector<8x96xf32> to vector<8x96xbf16>
    %c0_1 = arith.constant 0 : index
    %c0_2 = arith.constant 0 : index
    %2 = vector.load %arg2[%c0_1, %c0_2] : memref<32x96xf32, #tpu.memory_space<vmem>>, vector<32x96xf32>
    %3 = arith.truncf %2 : vector<32x96xf32> to vector<32x96xbf16>
    %cst = arith.constant dense<0.000000e+00> : vector<8x32xf32>
    %4 = tpu.matmul %1, %3, %cst {dimension_numbers = #tpu.dot_dimension_numbers<[1], [1], [0], [0], [0, 0, 1, 0], [], []>} : vector<8x96xbf16>, vector<32x96xbf16>, vector<8x32xf32> -> vector<8x32xf32>
    %c0_3 = arith.constant 0 : index
    %c0_4 = arith.constant 0 : index
    %5 = vector.load %arg3[%c0_3, %c0_4] : memref<8x32xf32, #tpu.memory_space<vmem>>, vector<8x32xf32>
    tpu.vector_store %arg3[%c0_3, %c0_4], %4 {strides = array<i32>} : memref<8x32xf32, #tpu.memory_space<vmem>>, vector<8x32xf32>,
    return
  }
  func.func @transform_0(%arg0: i32) -> (i32, i32) {
    %c0_i32 = arith.constant 0 : i32
    %c0_i32_0 = arith.constant 0 : i32
    return %arg0, %c0_i32 : i32, i32
  }
  func.func @transform_1(%arg0: i32) -> (i32, i32) {
    %c0_i32 = arith.constant 0 : i32
    %c0_i32_0 = arith.constant 0 : i32
    %c0_i32_1 = arith.constant 0 : i32
    return %c0_i32, %c0_i32_0 : i32, i32
  }
  func.func @transform_2(%arg0: i32) -> (i32, i32) {
    %c0_i32 = arith.constant 0 : i32
    %c0_i32_0 = arith.constant 0 : i32
    return %arg0, %c0_i32 : i32, i32
  }
}

module attributes {stable_mosaic.version = 11 : i64} {
  func.func @_dot_nt_kernel(%arg0: i32, %arg1: memref<8x32xf32, #tpu.memory_space<vmem>>, %arg2: memref<32x32xf32, #tpu.memory_space<vmem>>, %arg3: memref<8x32xf32, #tpu.memory_space<vmem>>) attributes {dimension_semantics = [#tpu.dimension_semantics<parallel>], iteration_bounds = array<i64: 1>, scalar_prefetch = 0 : i64, scratch_operands = 0 : i64, tpu.core_type = #tpu.core_type<tc>, window_params = [{transform_indices = @transform_0, window_bounds = array<i64: 8, 32>}, {pipeline_mode = #tpu.pipeline_mode<synchronous>, transform_indices = @transform_1, window_bounds = array<i64: 32, 32>}, {transform_indices = @transform_2, window_bounds = array<i64: 8, 32>}]} {
    %c0 = arith.constant 0 : index
    %c0_0 = arith.constant 0 : index
    %0 = vector.load %arg1[%c0, %c0_0] : memref<8x32xf32, #tpu.memory_space<vmem>>, vector<8x32xf32>
    %1 = arith.truncf %0 : vector<8x32xf32> to vector<8x32xbf16>
    %c0_1 = arith.constant 0 : index
    %c0_2 = arith.constant 0 : index
    %2 = vector.load %arg2[%c0_1, %c0_2] : memref<32x32xf32, #tpu.memory_space<vmem>>, vector<32x32xf32>
    %3 = arith.truncf %2 : vector<32x32xf32> to vector<32x32xbf16>
    %cst = arith.constant dense<0.000000e+00> : vector<8x32xf32>
    %4 = tpu.matmul %1, %3, %cst {dimension_numbers = #tpu.dot_dimension_numbers<[1], [1], [0], [0], [0, 0, 1, 0], [], []>} : vector<8x32xbf16>, vector<32x32xbf16>, vector<8x32xf32> -> vector<8x32xf32>
    %c0_3 = arith.constant 0 : index
    %c0_4 = arith.constant 0 : index
    %5 = vector.load %arg3[%c0_3, %c0_4] : memref<8x32xf32, #tpu.memory_space<vmem>>, vector<8x32xf32>
    tpu.vector_store %arg3[%c0_3, %c0_4], %4 {strides = array<i32>} : memref<8x32xf32, #tpu.memory_space<vmem>>, vector<8x32xf32>,
    return
  }
  func.func @transform_0(%arg0: i32) -> (i32, i32) {
    %c0_i32 = arith.constant 0 : i32
    %c0_i32_0 = arith.constant 0 : i32
    return %arg0, %c0_i32 : i32, i32
  }
  func.func @transform_1(%arg0: i32) -> (i32, i32) {
    %c0_i32 = arith.constant 0 : i32
    %c0_i32_0 = arith.constant 0 : i32
    %c0_i32_1 = arith.constant 0 : i32
    return %c0_i32, %c0_i32_0 : i32, i32
  }
  func.func @transform_2(%arg0: i32) -> (i32, i32) {
    %c0_i32 = arith.constant 0 : i32
    %c0_i32_0 = arith.constant 0 : i32
    return %arg0, %c0_i32 : i32, i32
  }
}

module attributes {stable_mosaic.version = 11 : i64} {
  func.func @_dot_nt_kernel(%arg0: i32, %arg1: memref<104x96xf32, #tpu.memory_space<vmem>>, %arg2: memref<16x96xf32, #tpu.memory_space<vmem>>, %arg3: memref<104x16xf32, #tpu.memory_space<vmem>>) attributes {dimension_semantics = [#tpu.dimension_semantics<parallel>], iteration_bounds = array<i64: 1>, scalar_prefetch = 0 : i64, scratch_operands = 0 : i64, tpu.core_type = #tpu.core_type<tc>, window_params = [{transform_indices = @transform_0, window_bounds = array<i64: 104, 96>}, {pipeline_mode = #tpu.pipeline_mode<synchronous>, transform_indices = @transform_1, window_bounds = array<i64: 16, 96>}, {transform_indices = @transform_2, window_bounds = array<i64: 104, 16>}]} {
    %c0 = arith.constant 0 : index
    %c0_0 = arith.constant 0 : index
    %0 = vector.load %arg1[%c0, %c0_0] : memref<104x96xf32, #tpu.memory_space<vmem>>, vector<104x96xf32>
    %1 = arith.truncf %0 : vector<104x96xf32> to vector<104x96xbf16>
    %c0_1 = arith.constant 0 : index
    %c0_2 = arith.constant 0 : index
    %2 = vector.load %arg2[%c0_1, %c0_2] : memref<16x96xf32, #tpu.memory_space<vmem>>, vector<16x96xf32>
    %3 = arith.truncf %2 : vector<16x96xf32> to vector<16x96xbf16>
    %cst = arith.constant dense<0.000000e+00> : vector<104x16xf32>
    %4 = tpu.matmul %1, %3, %cst {dimension_numbers = #tpu.dot_dimension_numbers<[1], [1], [0], [0], [0, 0, 1, 0], [], []>} : vector<104x96xbf16>, vector<16x96xbf16>, vector<104x16xf32> -> vector<104x16xf32>
    %c0_3 = arith.constant 0 : index
    %c0_4 = arith.constant 0 : index
    %5 = vector.load %arg3[%c0_3, %c0_4] : memref<104x16xf32, #tpu.memory_space<vmem>>, vector<104x16xf32>
    tpu.vector_store %arg3[%c0_3, %c0_4], %4 {strides = array<i32>} : memref<104x16xf32, #tpu.memory_space<vmem>>, vector<104x16xf32>,
    return
  }
  func.func @transform_0(%arg0: i32) -> (i32, i32) {
    %c0_i32 = arith.constant 0 : i32
    %c0_i32_0 = arith.constant 0 : i32
    return %arg0, %c0_i32 : i32, i32
  }
  func.func @transform_1(%arg0: i32) -> (i32, i32) {
    %c0_i32 = arith.constant 0 : i32
    %c0_i32_0 = arith.constant 0 : i32
    %c0_i32_1 = arith.constant 0 : i32
    return %c0_i32, %c0_i32_0 : i32, i32
  }
  func.func @transform_2(%arg0: i32) -> (i32, i32) {
    %c0_i32 = arith.constant 0 : i32
    %c0_i32_0 = arith.constant 0 : i32
    return %arg0, %c0_i32 : i32, i32
  }
}

</mosaic_0001>

<bundles_post_ra>
// kernel: jvp__.10
= control target key start
LH: loop header
LB: loop body
LE: loop exit
PB: predicated region body
PF: predicated region fallthrough
CT: control target
= control target key end

     0   :  { %v89_v0 = vmov 0.0   ;;  %vm90_vm0 = vmmov 0   ;;  %vm27_vm1 = vcmask 130048   ;;  %vm71_vm2 = vcmask 261120   ;;  %s126_s1 = inlined_call_operand.vmem [shape: f32[16,32], index: 1, kind: input, shape index: {}]   ;;  %s127_s0 = inlined_call_operand.vmem [shape: f32[8,16], index: 0, kind: input, shape index: {}]   ;;  %s128_s2 = inlined_call_operand.vmem [shape: f32[1,32], index: 2, kind: input, shape index: {}]   ;;  %s129_s3 = inlined_call_operand.vmem [shape: f32[8,32], index: 3, kind: output, shape index: {}]  }
   0x1   :  { %81 = vmatprep.subr.bf16.mxu0 %v89_v0  ;;  %v17_v1 = vld [vmem:[%s126_s1] sm:$0xff]  ;;  %v18_v2 = vld [vmem:[%s126_s1 + $0x8] sm:$0xff]  ;;  %83 = vmatprep.mubr.msk.bf16.mxu0 %vm90_vm0, %v89_v0 }
   0x2   :  { %v15_v3 = vld [vmem:[%s127_s0] sm:$0xff]  ;;  %v19_v4 = vpack.c.bf16 %v18_v2, %v17_v1 }
   0x3   :  { %v16_v5 = vpack.c.bf16 %v15_v3, %v15_v3  ;;  %v77_v6 = vld [vmem:[%s128_s2] ss:$0 sm:$0xff] }
   0x4   :  { %82 = vmatpush3.bf16.msra.mxu0 %v19_v4 }
   0x7   :  { %84 = vmatmul.mubr.msk.bf16.vlgmr.msra.gmra.mxu0 %vm27_vm1, %v16_v5 }
  0xc7   :  { %v65_v7 = vpop.f32.mrf.mxu0 }
  0xc8   :  { %v66_v8 = vadd.f32 %v77_v6, %v65_v7 }
  0xc9   :  { %v85_v9 = vpop.f32.mrf.mxu0 }
  0xca   :  { %72 = vst.msk [vmem:[%s129_s3] sm:$0xff] %vm71_vm2, %v66_v8 }
  0xcb   :  { %v68_v10 = vpop.f32.mrf.mxu0 }
  0xcd   :  { %v86_v11 = vpop.f32.mrf.mxu0 }

// kernel: jvp__.11
= control target key start
LH: loop header
LB: loop body
LE: loop exit
PB: predicated region body
PF: predicated region fallthrough
CT: control target
= control target key end

     0   :  { %v223_v3 = vmov 0.0   ;;  %vm224_vm0 = vmmov 0   ;;  %s303_s0 = inlined_call_operand.vmem [shape: f32[8,32], index: 0, kind: input, shape index: {}]   ;;  %s304_s1 = inlined_call_operand.vmem [shape: f32[32,32], index: 1, kind: input, shape index: {}]   ;;  %s305_s2 = inlined_call_operand.vmem [shape: f32[1,32], index: 2, kind: input, shape index: {}]   ;;  %s306_s3 = inlined_call_operand.vmem [shape: f32[32,96], index: 3, kind: input, shape index: {}]   ;;  %s307_s4 = inlined_call_operand.vmem [shape: f32[1,96], index: 4, kind: input, shape index: {}]   ;;  %s308_s5 = inlined_call_operand.vmem [shape: f32[8,96], index: 5, kind: output, shape index: {0}]   ;;  %s309_s6 = inlined_call_operand.hbm [shape: f32[8,32], index: 6, kind: output, shape index: {1}]  }
   0x1   :  { %v28_v0 = vld [vmem:[%s304_s1 + $0x10] sm:$0xff]  ;;  %v29_v1 = vld [vmem:[%s304_s1 + $0x18] sm:$0xff]  ;;  %v26_v2 = vld [vmem:[%s304_s1] sm:$0xff]  ;;  %178 = vmatprep.subr.bf16.mxu0 %v223_v3  ;;  %182 = vmatprep.mubr.msk.bf16.mxu0 %vm224_vm0, %v223_v3 }
   0x2   :  { %v31_v4 = vpack.c.bf16 %v29_v1, %v28_v0  ;;  %v27_v5 = vld [vmem:[%s304_s1 + $0x8] sm:$0xff]  ;;  %186 = vmatprep.subr.bf16.mxu1 %v223_v3  ;;  %190 = vmatprep.mubr.msk.bf16.mxu1 %vm224_vm0, %v223_v3 }
   0x3   :  { %12 = vsyncpa [#allocation3], 0  ;;  %v30_v6 = vpack.c.bf16 %v27_v5, %v26_v2  ;;  %v24_v7 = vld [vmem:[%s303_s0] sm:$0xff]  ;;  %vm39_vm1 = vcmask 261120   ;;  %v94_v9 = vld [vmem:[%s306_s3 + $0x10] sm:$0xff] }
   0x4   :  { %179 = vmatpush3.bf16.msra.mxu0 %v31_v4  ;;  %v25_v8 = vpack.c.bf16 %v24_v7, %v24_v7  ;;  %v95_v10 = vld [vmem:[%s306_s3 + $0x18] sm:$0xff]  ;;  %v92_v12 = vld [vmem:[%s306_s3] sm:$0xff]  ;;  %v93_v13 = vld [vmem:[%s306_s3 + $0x8] sm:$0xff]  ;;  %s225_s3 = smov [#allocation2]  }
   0x5   :  { %180 = vmatprep.subr.bf16.mxu0 %v223_v3  ;;  %v97_v11 = vpack.c.bf16 %v95_v10, %v94_v9  ;;  %v96_v14 = vpack.c.bf16 %v93_v13, %v92_v12  ;;  %v168_v15 = vld [vmem:[%s305_s2] ss:$0 sm:$0xff]  ;;  %s158_s2 = sshll.u32 %s225_s3, 4  ;;  %s159_s2 = int_to_ptr.vmem [resolvable:$true] %s158_s2 }
   0x6   :  { %s201_s15 = scalar_lea.vmem %s159_s2, 128  ;;  %p206_p1 = scmp.lt.s32.totalorder %s159_s2, %s159_s2 }
   0x7   :  { %187 = vmatpush3.bf16.msra.mxu1 %v97_v11  ;;  %p202_p0 = scmp.ne.s32.totalorder %s159_s2, %s201_s15  ;;  %p207_p2 = scmp.lt.s32.totalorder %s201_s15, %s201_s15 }
   0x8   :  { %181 = vmatpush3.bf16.msra.mxu0 %v30_v6  ;;  %188 = vmatprep.subr.bf16.mxu1 %v223_v3 }
   0x9   :  { %p208_p3 = por %p207_p2, %p206_p1 }
   0xb   :  { %183 = vmatmul.mubr.msk.bf16.vlgmr.msra.gmra.mxu0 %vm39_vm1, %v25_v8  ;;  %189 = vmatpush3.bf16.msra.mxu1 %v96_v14  ;;  %p209_p4 = pnand %p208_p3, %p202_p0 }
  0xcb   :  { %v77_v16 = vpop.f32.mrf.mxu0 }
  0xcc   :  { %v78_v17 = vadd.f32 %v168_v15, %v77_v16 }
  0xcd   :  { %v184_v18 = vpop.f32.mrf.mxu0 }
  0xce   :  { %v84_v19 = vsub.f32 0.0, %v78_v17  ;;  %83 = vst.msk [vmem:[#allocation2] sm:$0xff] %vm39_vm1, %v78_v17 }
  0xcf   :  { %v80_v20 = vpop.f32.mrf.mxu0 }
  0xd0   :  { %v85_v21 = vmul.f32 1.442695, %v84_v19 }
  0xd1   :  { %v185_v22 = vpop.f32.mrf.mxu0 }
  0xd2   :  { %197 = vpow2.f32 %v85_v21 }
  0xdf   :  { %v198_v23 = vpop.eup %197 }
  0xe0   :  { %v87_v24 = vadd.f32 1.0, %v198_v23 }
  0xe2   :  { %199 = vrcp.f32 %v87_v24 }
  0xef   :  { %v200_v25 = vpop.eup %199 }
  0xf0   :  { %v90_v26 = vmul.f32 %v200_v25, %v78_v17 }
  0xf2   :  { %v91_v27 = vpack.c.bf16 %v90_v26, %v90_v26 }
  0xf4   :  { %191 = vmatmul.mubr.msk.bf16.vlgmr.msra.gmra.mxu1 %vm39_vm1, %v91_v27 }
  0xf5   :  { %212 = shalt.err (!%p209_p4)
}
  0xf6   :  { %161 = dma.vmem_to_hbm [thread:$0]  %s159_s2, 128, %s309_s6, [#allocation3]   ;;  %v170_v28 = vld [vmem:[%s307_s4] ss:$0 sm:$0xff]  ;;  %vm148_vm2 = vcmask 785408  }
 0x1b4   :  { %v142_v29 = vpop.f32.mrf.mxu1 }
 0x1b5   :  { %v143_v30 = vadd.f32 %v170_v28, %v142_v29 }
 0x1b6   :  { %v192_v31 = vpop.f32.mrf.mxu1 }
 0x1b7   :  { %149 = vst.msk [vmem:[%s308_s5] sm:$0xff] %vm148_vm2, %v143_v30 }
 0x1b8   :  { %v145_v32 = vpop.f32.mrf.mxu1 }
 0x1ba   :  { %v193_v33 = vpop.f32.mrf.mxu1 }
 0x1bb   :  { %221 = dma.done.wait [#allocation3], 128  }
 0x1bc   :  { %222 = vsyncadd [#allocation3], 4294967168 }
 0x1bd   :  { %167 = vsyncpa [#allocation3], 1 }

// kernel: mul.155
= control target key start
LH: loop header
LB: loop body
LE: loop exit
PB: predicated region body
PF: predicated region fallthrough
CT: control target
= control target key end

     0   :  { %s298_s0 = inlined_call_operand.vmem [shape: f32[104,96], index: 0, kind: input, shape index: {}]   ;;  %s299_s1 = inlined_call_operand.vmem [shape: f32[104,96], index: 1, kind: input, shape index: {}]   ;;  %s300_s2 = inlined_call_operand.vmem [shape: f32[104,96], index: 2, kind: output, shape index: {}]  }
   0x1   :  { %v3_v0 = vld [vmem:[%s298_s0] sm:$0xff]  ;;  %v130_v2 = vld [vmem:[%s298_s0 + $0x8] sm:$0xff]  ;;  %v133_v5 = vld [vmem:[%s298_s0 + $0x10] sm:$0xff] }
   0x2   :  { %v4_v1 = vld [vmem:[%s299_s1] sm:$0xff]  ;;  %v131_v4 = vld [vmem:[%s299_s1 + $0x8] sm:$0xff]  ;;  %v134_v6 = vld [vmem:[%s299_s1 + $0x10] sm:$0xff] }
   0x3   :  { %v7_v3 = vmul.f32 %v4_v1, %v3_v0  ;;  %v16_v7 = vmul.f32 %v131_v4, %v130_v2  ;;  %v26_v8 = vmul.f32 %v134_v6, %v133_v5  ;;  %v136_v9 = vld [vmem:[%s298_s0 + $0x18] sm:$0xff]  ;;  %v139_v11 = vld [vmem:[%s298_s0 + $0x20] sm:$0xff]  ;;  %v142_v14 = vld [vmem:[%s298_s0 + $0x28] sm:$0xff] }
   0x4   :  { %v137_v10 = vld [vmem:[%s299_s1 + $0x18] sm:$0xff]  ;;  %v140_v13 = vld [vmem:[%s299_s1 + $0x20] sm:$0xff]  ;;  %v143_v15 = vld [vmem:[%s299_s1 + $0x28] sm:$0xff] }
   0x5   :  { %9 = vst [vmem:[%s300_s2] sm:$0xff] %v7_v3  ;;  %v36_v12 = vmul.f32 %v137_v10, %v136_v9  ;;  %132 = vst [vmem:[%s300_s2 + $0x8] sm:$0xff] %v16_v7  ;;  %v46_v16 = vmul.f32 %v140_v13, %v139_v11  ;;  %v56_v17 = vmul.f32 %v143_v15, %v142_v14  ;;  %v145_v18 = vld [vmem:[%s298_s0 + $0x30] sm:$0xff]  ;;  %v148_v20 = vld [vmem:[%s298_s0 + $0x38] sm:$0xff] }
   0x6   :  { %135 = vst [vmem:[%s300_s2 + $0x10] sm:$0xff] %v26_v8  ;;  %v146_v19 = vld [vmem:[%s299_s1 + $0x30] sm:$0xff]  ;;  %v149_v22 = vld [vmem:[%s299_s1 + $0x38] sm:$0xff]  ;;  %v151_v23 = vld [vmem:[%s298_s0 + $0x40] sm:$0xff] }
   0x7   :  { %138 = vst [vmem:[%s300_s2 + $0x18] sm:$0xff] %v36_v12  ;;  %v66_v21 = vmul.f32 %v146_v19, %v145_v18  ;;  %v152_v24 = vld [vmem:[%s299_s1 + $0x40] sm:$0xff]  ;;  %141 = vst [vmem:[%s300_s2 + $0x20] sm:$0xff] %v46_v16  ;;  %v76_v25 = vmul.f32 %v149_v22, %v148_v20  ;;  %v154_v27 = vld [vmem:[%s298_s0 + $0x48] sm:$0xff] }
   0x8   :  { %144 = vst [vmem:[%s300_s2 + $0x28] sm:$0xff] %v56_v17  ;;  %v86_v26 = vmul.f32 %v152_v24, %v151_v23  ;;  %v155_v28 = vld [vmem:[%s299_s1 + $0x48] sm:$0xff]  ;;  %v157_v29 = vld [vmem:[%s298_s0 + $0x50] sm:$0xff]  ;;  %v160_v32 = vld [vmem:[%s298_s0 + $0x58] sm:$0xff] }
   0x9   :  { %147 = vst [vmem:[%s300_s2 + $0x30] sm:$0xff] %v66_v21  ;;  %v96_v30 = vmul.f32 %v155_v28, %v154_v27  ;;  %v158_v31 = vld [vmem:[%s299_s1 + $0x50] sm:$0xff]  ;;  %v161_v33 = vld [vmem:[%s299_s1 + $0x58] sm:$0xff]  ;;  %150 = vst [vmem:[%s300_s2 + $0x38] sm:$0xff] %v76_v25 }
   0xa   :  { %153 = vst [vmem:[%s300_s2 + $0x40] sm:$0xff] %v86_v26  ;;  %v106_v34 = vmul.f32 %v158_v31, %v157_v29  ;;  %v116_v35 = vmul.f32 %v161_v33, %v160_v32  ;;  %v163_v36 = vld [vmem:[%s298_s0 + $0x60] sm:$0xff] }
   0xb   :  { %v164_v37 = vld [vmem:[%s299_s1 + $0x60] sm:$0xff]  ;;  %156 = vst [vmem:[%s300_s2 + $0x48] sm:$0xff] %v96_v30 }
   0xc   :  { %v126_v38 = vmul.f32 %v164_v37, %v163_v36  ;;  %159 = vst [vmem:[%s300_s2 + $0x50] sm:$0xff] %v106_v34  ;;  %162 = vst [vmem:[%s300_s2 + $0x58] sm:$0xff] %v116_v35 }
   0xe   :  { %165 = vst [vmem:[%s300_s2 + $0x60] sm:$0xff] %v126_v38 }

// kernel: jvp__.12
= control target key start
LH: loop header
LB: loop body
LE: loop exit
PB: predicated region body
PF: predicated region fallthrough
CT: control target
= control target key end

     0   :  { %v339_v0 = vmov 0.0   ;;  %vm340_vm0 = vmmov 0   ;;  %v341_v10 = vmov 0   ;;  %vm50_vm1 = vcmask 130048   ;;  %s604_s1 = inlined_call_operand.vmem [shape: f32[16,96], index: 1, kind: input, shape index: {}]   ;;  %s605_s0 = inlined_call_operand.vmem [shape: f32[104,16], index: 0, kind: input, shape index: {}]   ;;  %s606_s3 = inlined_call_operand.vmem [shape: f32[104,1], index: 3, kind: input, shape index: {}]   ;;  %s607_s2 = inlined_call_operand.vmem [shape: f32[1,96], index: 2, kind: input, shape index: {}]   ;;  %s608_s5 = inlined_call_operand.vmem [shape: f32[104,96], index: 5, kind: output, shape index: {1}]   ;;  %s609_s4 = inlined_call_operand.vmem [shape: f32[104,96], index: 4, kind: output, shape index: {0}]  }
   0x1   :  { %302 = vmatprep.subr.bf16.mxu0 %v339_v0  ;;  %332 = vmatprep.subr.bf16.mxu1 %v339_v0  ;;  %v40_v1 = vld [vmem:[%s604_s1] sm:$0xff]  ;;  %v41_v2 = vld [vmem:[%s604_s1 + $0x8] sm:$0xff]  ;;  %v176_v12 = vld [vmem:[%s606_s3 + $0x10] sm:$0xff]  ;;  %vm160_vm2 = vcmask 785408  }
   0x2   :  { %v20_v3 = vld [vmem:[%s605_s0] sm:$0xff]  ;;  %v42_v4 = vpack.c.bf16 %v41_v2, %v40_v1  ;;  %304 = vmatprep.mubr.msk.bf16.mxu0 %vm340_vm0, %v339_v0  ;;  %320 = vmatprep.mubr.msk.bf16.mxu1 %vm340_vm0, %v339_v0  ;;  %v21_v5 = vld [vmem:[%s605_s0 + $0x8] sm:$0xff]  ;;  %v22_v13 = vld [vmem:[%s605_s0 + $0x10] sm:$0xff] }
   0x3   :  { %v28_v6 = vld [vmem:[%s605_s0 + $0x40] sm:$0xff]  ;;  %v29_v7 = vld [vmem:[%s605_s0 + $0x48] sm:$0xff]  ;;  %v33_v8 = vpack.c.bf16 %v21_v5, %v20_v3  ;;  %337 = vset.pattern.permute.xlu0 %v341_v10  ;;  %338 = vset.pattern.permute.xlu1 %v341_v10  ;;  %v23_v14 = vld [vmem:[%s605_s0 + $0x18] sm:$0xff] }
   0x4   :  { %v37_v9 = vpack.c.bf16 %v29_v7, %v28_v6  ;;  %303 = vmatpush3.bf16.msra.mxu0 %v42_v4  ;;  %333 = vmatpush3.bf16.msra.mxu1 %v42_v4  ;;  %v174_v11 = vld [vmem:[%s606_s3] sm:$0xff]  ;;  %v30_v15 = vld [vmem:[%s605_s0 + $0x50] sm:$0xff]  ;;  %v31_v16 = vld [vmem:[%s605_s0 + $0x58] sm:$0xff]  ;;  %v34_v19 = vpack.c.bf16 %v23_v14, %v22_v13 }
   0x5   :  { %189 = vperm.xlu0 %337, %v174_v11   ;;  %199 = vperm.xlu1 %338, %v176_v12   ;;  %v175_v17 = vld [vmem:[%s606_s3 + $0x8] sm:$0xff]  ;;  %v177_v18 = vld [vmem:[%s606_s3 + $0x18] sm:$0xff]  ;;  %v38_v20 = vpack.c.bf16 %v31_v16, %v30_v15  ;;  %v178_v21 = vld [vmem:[%s606_s3 + $0x20] sm:$0xff] }
   0x6   :  { %v179_v22 = vld [vmem:[%s606_s3 + $0x28] sm:$0xff]  ;;  %v24_v23 = vld [vmem:[%s605_s0 + $0x20] sm:$0xff]  ;;  %v180_v26 = vld [vmem:[%s606_s3 + $0x30] sm:$0xff] }
   0x7   :  { %305 = vmatmul.mubr.msk.bf16.vlgmr.msra.gmra.mxu0 %vm50_vm1, %v33_v8  ;;  %321 = vmatmul.mubr.msk.bf16.vlgmr.msra.gmra.mxu1 %vm50_vm1, %v37_v9  ;;  %v25_v24 = vld [vmem:[%s605_s0 + $0x28] sm:$0xff]  ;;  %v32_v25 = vld [vmem:[%s605_s0 + $0x60] sm:$0xff]  ;;  %v181_v27 = vld [vmem:[%s606_s3 + $0x38] sm:$0xff] }
   0x8   :  { %308 = vmatprep.mubr.msk.bf16.mxu0 %vm340_vm0, %v339_v0  ;;  %324 = vmatprep.mubr.msk.bf16.mxu1 %vm340_vm0, %v339_v0  ;;  %v35_v28 = vpack.c.bf16 %v25_v24, %v24_v23  ;;  %v39_v29 = vpack.c.bf16 %v32_v25, %v32_v25  ;;  %v182_v30 = vld [vmem:[%s606_s3 + $0x40] sm:$0xff]  ;;  %v183_v31 = vld [vmem:[%s606_s3 + $0x48] sm:$0xff]  ;;  %v26_v32 = vld [vmem:[%s605_s0 + $0x30] sm:$0xff] }
   0x9   :  { %194 = vperm.xlu0 %337, %v175_v17   ;;  %204 = vperm.xlu1 %338, %v177_v18   ;;  %v27_v33 = vld [vmem:[%s605_s0 + $0x38] sm:$0xff]  ;;  %v184_v34 = vld [vmem:[%s606_s3 + $0x50] sm:$0xff]  ;;  %v186_v37 = vld [vmem:[%s606_s3 + $0x60] sm:$0xff] }
   0xa   :  { %v185_v35 = vld [vmem:[%s606_s3 + $0x58] sm:$0xff]  ;;  %v36_v36 = vpack.c.bf16 %v27_v33, %v26_v32  ;;  %v479_v45 = vld [vmem:[%s607_s2] ss:$0 sm:$0xff] }
   0xd   :  { %209 = vperm.xlu0 %337, %v178_v21   ;;  %214 = vperm.xlu1 %338, %v179_v22  }
   0xf   :  { %309 = vmatmul.mubr.msk.bf16.gmra.mxu0 %vm50_vm1, %v34_v19  ;;  %325 = vmatmul.mubr.msk.bf16.gmra.mxu1 %vm50_vm1, %v38_v20 }
  0x10   :  { %312 = vmatprep.mubr.msk.bf16.mxu0 %vm340_vm0, %v339_v0  ;;  %328 = vmatprep.mubr.msk.bf16.mxu1 %vm340_vm0, %v339_v0 }
  0x11   :  { %219 = vperm.xlu0 %337, %v180_v26   ;;  %224 = vperm.xlu1 %338, %v181_v27  }
  0x15   :  { %229 = vperm.xlu0 %337, %v182_v30   ;;  %234 = vperm.xlu1 %338, %v183_v31  }
  0x17   :  { %313 = vmatmul.mubr.msk.bf16.gmra.mxu0 %vm50_vm1, %v35_v28  ;;  %329 = vmatmul.mubr.msk.bf16.gmra.mxu1 %vm50_vm1, %v39_v29 }
  0x18   :  { %316 = vmatprep.mubr.msk.bf16.mxu0 %vm340_vm0, %v339_v0 }
  0x19   :  { %239 = vperm.xlu0 %337, %v184_v34   ;;  %244 = vperm.xlu1 %338, %v185_v35  }
  0x1d   :  { %249 = vperm.xlu0 %337, %v186_v37  }
  0x1f   :  { %317 = vmatmul.mubr.msk.bf16.gmra.mxu0 %vm50_vm1, %v36_v36 }
  0x80   :  { %v190_v38 = vpop.permute.xlu0 %189  ;;  %v200_v39 = vpop.permute.xlu1 %199 }
  0x84   :  { %v195_v40 = vpop.permute.xlu0 %194  ;;  %v205_v41 = vpop.permute.xlu1 %204 }
  0x88   :  { %v470_v42 = vpop.permute.xlu0 %209  ;;  %v472_v43 = vpop.permute.xlu1 %214 }
  0x8c   :  { %v474_v44 = vpop.permute.xlu0 %219  ;;  %v481_v46 = vpop.permute.xlu1 %224 }
  0x90   :  { %v230_v49 = vpop.permute.xlu0 %229  ;;  %v235_v60 = vpop.permute.xlu1 %234 }
  0x94   :  { %v240_v3 = vpop.permute.xlu0 %239  ;;  %v245_v12 = vpop.permute.xlu1 %244 }
  0x98   :  { %v250_v21 = vpop.permute.xlu0 %249 }
  0xc7   :  { %v106_v47 = vpop.f32.mrf.mxu0  ;;  %v138_v48 = vpop.f32.mrf.mxu1 }
  0xc8   :  { %v107_v50 = vadd.f32 %v479_v45, %v106_v47  ;;  %v139_v51 = vadd.f32 %v479_v45, %v138_v48 }
  0xc9   :  { %v306_v52 = vpop.f32.mrf.mxu0  ;;  %v322_v53 = vpop.f32.mrf.mxu1 }
  0xca   :  { %161 = vst.msk [vmem:[%s608_s5] sm:$0xff] %vm160_vm2, %v107_v50  ;;  %v252_v54 = vmul.f32 %v190_v38, %v107_v50  ;;  %169 = vst.msk [vmem:[%s608_s5 + $0x40] sm:$0xff] %vm160_vm2, %v139_v51  ;;  %v260_v55 = vmul.f32 %v230_v49, %v139_v51 }
  0xcb   :  { %v109_v56 = vpop.f32.mrf.mxu0  ;;  %v141_v57 = vpop.f32.mrf.mxu1 }
  0xcc   :  { %265 = vst.msk [vmem:[%s609_s4] sm:$0xff] %vm160_vm2, %v252_v54  ;;  %273 = vst.msk [vmem:[%s609_s4 + $0x40] sm:$0xff] %vm160_vm2, %v260_v55  ;;  %v110_v58 = vadd.f32 %v479_v45, %v109_v56  ;;  %v142_v59 = vadd.f32 %v479_v45, %v141_v57 }
  0xcd   :  { %v307_v61 = vpop.f32.mrf.mxu0  ;;  %v323_v62 = vpop.f32.mrf.mxu1 }
  0xce   :  { %162 = vst.msk [vmem:[%s608_s5 + $0x8] sm:$0xff] %vm160_vm2, %v110_v58  ;;  %v253_v63 = vmul.f32 %v195_v40, %v110_v58  ;;  %170 = vst.msk [vmem:[%s608_s5 + $0x48] sm:$0xff] %vm160_vm2, %v142_v59  ;;  %v261_v0 = vmul.f32 %v235_v60, %v142_v59 }
  0xcf   :  { %v114_v1 = vpop.f32.mrf.mxu0  ;;  %v146_v2 = vpop.f32.mrf.mxu1 }
  0xd0   :  { %266 = vst.msk [vmem:[%s609_s4 + $0x8] sm:$0xff] %vm160_vm2, %v253_v63  ;;  %274 = vst.msk [vmem:[%s609_s4 + $0x48] sm:$0xff] %vm160_vm2, %v261_v0  ;;  %v115_v4 = vadd.f32 %v479_v45, %v114_v1  ;;  %v147_v5 = vadd.f32 %v479_v45, %v146_v2 }
  0xd1   :  { %v310_v6 = vpop.f32.mrf.mxu0  ;;  %v326_v7 = vpop.f32.mrf.mxu1 }
  0xd2   :  { %163 = vst.msk [vmem:[%s608_s5 + $0x10] sm:$0xff] %vm160_vm2, %v115_v4  ;;  %v254_v8 = vmul.f32 %v200_v39, %v115_v4  ;;  %171 = vst.msk [vmem:[%s608_s5 + $0x50] sm:$0xff] %vm160_vm2, %v147_v5  ;;  %v262_v9 = vmul.f32 %v240_v3, %v147_v5 }
  0xd3   :  { %v117_v10 = vpop.f32.mrf.mxu0  ;;  %v149_v11 = vpop.f32.mrf.mxu1 }
  0xd4   :  { %267 = vst.msk [vmem:[%s609_s4 + $0x10] sm:$0xff] %vm160_vm2, %v254_v8  ;;  %275 = vst.msk [vmem:[%s609_s4 + $0x50] sm:$0xff] %vm160_vm2, %v262_v9  ;;  %v118_v13 = vadd.f32 %v479_v45, %v117_v10  ;;  %v150_v14 = vadd.f32 %v479_v45, %v149_v11 }
  0xd5   :  { %v311_v15 = vpop.f32.mrf.mxu0  ;;  %v327_v16 = vpop.f32.mrf.mxu1 }
  0xd6   :  { %164 = vst.msk [vmem:[%s608_s5 + $0x18] sm:$0xff] %vm160_vm2, %v118_v13  ;;  %v255_v17 = vmul.f32 %v205_v41, %v118_v13  ;;  %172 = vst.msk [vmem:[%s608_s5 + $0x58] sm:$0xff] %vm160_vm2, %v150_v14  ;;  %v263_v18 = vmul.f32 %v245_v12, %v150_v14 }
  0xd7   :  { %v122_v19 = vpop.f32.mrf.mxu0  ;;  %v154_v20 = vpop.f32.mrf.mxu1 }
  0xd8   :  { %268 = vst.msk [vmem:[%s609_s4 + $0x18] sm:$0xff] %vm160_vm2, %v255_v17  ;;  %276 = vst.msk [vmem:[%s609_s4 + $0x58] sm:$0xff] %vm160_vm2, %v263_v18  ;;  %v123_v22 = vadd.f32 %v479_v45, %v122_v19  ;;  %v155_v23 = vadd.f32 %v479_v45, %v154_v20 }
  0xd9   :  { %v314_v24 = vpop.f32.mrf.mxu0  ;;  %v330_v25 = vpop.f32.mrf.mxu1 }
  0xda   :  { %165 = vst.msk [vmem:[%s608_s5 + $0x20] sm:$0xff] %vm160_vm2, %v123_v22  ;;  %v256_v26 = vmul.f32 %v470_v42, %v123_v22  ;;  %173 = vst.msk [vmem:[%s608_s5 + $0x60] sm:$0xff] %vm160_vm2, %v155_v23  ;;  %v264_v27 = vmul.f32 %v250_v21, %v155_v23 }
  0xdb   :  { %v125_v28 = vpop.f32.mrf.mxu0  ;;  %v157_v29 = vpop.f32.mrf.mxu1 }
  0xdc   :  { %269 = vst.msk [vmem:[%s609_s4 + $0x20] sm:$0xff] %vm160_vm2, %v256_v26  ;;  %277 = vst.msk [vmem:[%s609_s4 + $0x60] sm:$0xff] %vm160_vm2, %v264_v27  ;;  %v126_v30 = vadd.f32 %v479_v45, %v125_v28 }
  0xdd   :  { %v315_v31 = vpop.f32.mrf.mxu0  ;;  %v331_v32 = vpop.f32.mrf.mxu1 }
  0xde   :  { %166 = vst.msk [vmem:[%s608_s5 + $0x28] sm:$0xff] %vm160_vm2, %v126_v30  ;;  %v257_v33 = vmul.f32 %v472_v43, %v126_v30 }
  0xdf   :  { %v130_v34 = vpop.f32.mrf.mxu0 }
  0xe0   :  { %270 = vst.msk [vmem:[%s609_s4 + $0x28] sm:$0xff] %vm160_vm2, %v257_v33  ;;  %v131_v35 = vadd.f32 %v479_v45, %v130_v34 }
  0xe1   :  { %v318_v36 = vpop.f32.mrf.mxu0 }
  0xe2   :  { %167 = vst.msk [vmem:[%s608_s5 + $0x30] sm:$0xff] %vm160_vm2, %v131_v35  ;;  %v258_v37 = vmul.f32 %v474_v44, %v131_v35 }
  0xe3   :  { %v133_v38 = vpop.f32.mrf.mxu0 }
  0xe4   :  { %271 = vst.msk [vmem:[%s609_s4 + $0x30] sm:$0xff] %vm160_vm2, %v258_v37  ;;  %v134_v39 = vadd.f32 %v479_v45, %v133_v38 }
  0xe5   :  { %v319_v40 = vpop.f32.mrf.mxu0 }
  0xe6   :  { %168 = vst.msk [vmem:[%s608_s5 + $0x38] sm:$0xff] %vm160_vm2, %v134_v39  ;;  %v259_v41 = vmul.f32 %v481_v46, %v134_v39 }
  0xe8   :  { %272 = vst.msk [vmem:[%s609_s4 + $0x38] sm:$0xff] %vm160_vm2, %v259_v41 }

// kernel: jvp__.13
= control target key start
LH: loop header
LB: loop body
LE: loop exit
PB: predicated region body
PF: predicated region fallthrough
CT: control target
= control target key end

     0   :  { %vm23_vm0 = vcmask 261120   ;;  %vm78_vm1 = vcmask 523264   ;;  %s145_s1 = inlined_call_operand.vmem [shape: f32[32,64], index: 1, kind: input, shape index: {}]   ;;  %s146_s0 = inlined_call_operand.vmem [shape: f32[24,32], index: 0, kind: input, shape index: {}]   ;;  %s147_s2 = inlined_call_operand.vmem [shape: f32[24,64], index: 2, kind: output, shape index: {}]  }
   0x1   :  { %v19_v0 = vld [vmem:[%s145_s1 + $0x10] sm:$0xff]  ;;  %v20_v1 = vld [vmem:[%s145_s1 + $0x18] sm:$0xff]  ;;  %v17_v2 = vld [vmem:[%s145_s1] sm:$0xff] }
   0x2   :  { %v22_v3 = vpack.c.bf16 %v20_v1, %v19_v0  ;;  %v18_v4 = vld [vmem:[%s145_s1 + $0x8] sm:$0xff]  ;;  %v12_v5 = vld [vmem:[%s146_s0] sm:$0xff]  ;;  %v14_v9 = vld [vmem:[%s146_s0 + $0x10] sm:$0xff] }
   0x3   :  { %v13_v6 = vld [vmem:[%s146_s0 + $0x8] sm:$0xff]  ;;  %v21_v7 = vpack.c.bf16 %v18_v4, %v17_v2  ;;  %v16_v10 = vpack.c.bf16 %v14_v9, %v14_v9 }
   0x4   :  { %v15_v8 = vpack.c.bf16 %v13_v6, %v12_v5  ;;  %92 = vmatprep.subr.bf16.mxu0 %v22_v3 }
   0x5   :  { %93 = vmatpush3.bf16.msra.mxu0 %v22_v3 }
   0x6   :  { %96 = vmatprep.mubr.msk.bf16.mxu0 %vm23_vm0, %v15_v8  ;;  %94 = vmatprep.subr.bf16.mxu0 %v21_v7 }
   0x9   :  { %95 = vmatpush3.bf16.msra.mxu0 %v21_v7 }
   0xc   :  { %97 = vmatmul.mubr.msk.bf16.vlgmr.msra.gmra.mxu0 %vm23_vm0, %v16_v10 }
  0xcc   :  { %v98_v11 = vpop.f32.mrf.mxu0 }
  0xcd   :  { %81 = vst.msk [vmem:[%s147_s2 + $0x10] sm:$0xff] %vm78_vm1, %v98_v11 }
  0xce   :  { %v64_v12 = vpop.f32.mrf.mxu0 }
  0xcf   :  { %79 = vst.msk [vmem:[%s147_s2] sm:$0xff] %vm78_vm1, %v64_v12 }
  0xd0   :  { %v99_v13 = vpop.f32.mrf.mxu0 }
  0xd2   :  { %v67_v14 = vpop.f32.mrf.mxu0 }
  0xd3   :  { %80 = vst.msk [vmem:[%s147_s2 + $0x8] sm:$0xff] %vm78_vm1, %v67_v14 }

// kernel: jvp__.14
= control target key start
LH: loop header
LB: loop body
LE: loop exit
PB: predicated region body
PF: predicated region fallthrough
CT: control target
= control target key end

     0   :  { %v202_v0 = vmov 0.0   ;;  %vm203_vm0 = vmmov 0   ;;  %vm44_vm1 = vcmask 523264   ;;  %vm88_vm2 = vcmask 261120   ;;  %s290_s1 = inlined_call_operand.vmem [shape: f32[64,32], index: 1, kind: input, shape index: {}]   ;;  %s291_s0 = inlined_call_operand.vmem [shape: f32[8,64], index: 0, kind: input, shape index: {}]   ;;  %s292_s3 = inlined_call_operand.vmem [shape: f32[32,96], index: 3, kind: input, shape index: {}]   ;;  %s293_s2 = inlined_call_operand.vmem [shape: f32[1,32], index: 2, kind: input, shape index: {}]   ;;  %s294_s6 = inlined_call_operand.vmem [shape: f32[8,32], index: 6, kind: output, shape index: {1}]   ;;  %s295_s4 = inlined_call_operand.vmem [shape: f32[1,96], index: 4, kind: input, shape index: {}]   ;;  %s296_s5 = inlined_call_operand.vmem [shape: f32[8,96], index: 5, kind: output, shape index: {0}]  }
   0x1   :  { %176 = vmatprep.subr.bf16.mxu0 %v202_v0  ;;  %v31_v1 = vld [vmem:[%s290_s1 + $0x30] sm:$0xff]  ;;  %v32_v2 = vld [vmem:[%s290_s1 + $0x38] sm:$0xff]  ;;  %v29_v3 = vld [vmem:[%s290_s1 + $0x20] sm:$0xff]  ;;  %184 = vmatprep.mubr.msk.bf16.mxu0 %vm203_vm0, %v202_v0  ;;  %vm154_vm3 = vcmask 785408  }
   0x2   :  { %v36_v4 = vpack.c.bf16 %v32_v2, %v31_v1  ;;  %v30_v5 = vld [vmem:[%s290_s1 + $0x28] sm:$0xff]  ;;  %188 = vmatprep.subr.bf16.mxu1 %v202_v0  ;;  %192 = vmatprep.mubr.msk.bf16.mxu1 %vm203_vm0, %v202_v0  ;;  %v27_v7 = vld [vmem:[%s290_s1 + $0x10] sm:$0xff]  ;;  %v28_v8 = vld [vmem:[%s290_s1 + $0x18] sm:$0xff] }
   0x3   :  { %v35_v6 = vpack.c.bf16 %v30_v5, %v29_v3  ;;  %v34_v9 = vpack.c.bf16 %v28_v8, %v27_v7  ;;  %v25_v10 = vld [vmem:[%s290_s1] sm:$0xff]  ;;  %v26_v11 = vld [vmem:[%s290_s1 + $0x8] sm:$0xff]  ;;  %v100_v15 = vld [vmem:[%s292_s3 + $0x10] sm:$0xff] }
   0x4   :  { %177 = vmatpush3.bf16.msra.mxu0 %v36_v4  ;;  %v33_v12 = vpack.c.bf16 %v26_v11, %v25_v10  ;;  %v23_v13 = vld [vmem:[%s291_s0] sm:$0xff]  ;;  %v101_v16 = vld [vmem:[%s292_s3 + $0x18] sm:$0xff]  ;;  %v99_v19 = vld [vmem:[%s292_s3 + $0x8] sm:$0xff] }
   0x5   :  { %178 = vmatprep.subr.bf16.mxu0 %v202_v0  ;;  %v24_v14 = vpack.c.bf16 %v23_v13, %v23_v13  ;;  %v103_v17 = vpack.c.bf16 %v101_v16, %v100_v15  ;;  %v98_v18 = vld [vmem:[%s292_s3] sm:$0xff] }
   0x6   :  { %v102_v20 = vpack.c.bf16 %v99_v19, %v98_v18  ;;  %v164_v21 = vld [vmem:[%s293_s2] ss:$0 sm:$0xff] }
   0x7   :  { %189 = vmatpush3.bf16.msra.mxu1 %v103_v17  ;;  %v166_v34 = vld [vmem:[%s295_s4] ss:$0 sm:$0xff] }
   0x8   :  { %179 = vmatpush3.bf16.msra.mxu0 %v35_v6  ;;  %190 = vmatprep.subr.bf16.mxu1 %v202_v0 }
   0x9   :  { %180 = vmatprep.subr.bf16.mxu0 %v202_v0 }
   0xb   :  { %191 = vmatpush3.bf16.msra.mxu1 %v102_v20 }
   0xc   :  { %181 = vmatpush3.bf16.msra.mxu0 %v34_v9 }
   0xd   :  { %182 = vmatprep.subr.bf16.mxu0 %v202_v0 }
  0x10   :  { %183 = vmatpush3.bf16.msra.mxu0 %v33_v12 }
  0x13   :  { %185 = vmatmul.mubr.msk.bf16.vlgmr.msra.gmra.mxu0 %vm44_vm1, %v24_v14 }
  0xd3   :  { %v82_v22 = vpop.f32.mrf.mxu0 }
  0xd4   :  { %v83_v23 = vadd.f32 %v164_v21, %v82_v22 }
  0xd5   :  { %v186_v24 = vpop.f32.mrf.mxu0 }
  0xd6   :  { %v90_v25 = vsub.f32 0.0, %v83_v23  ;;  %89 = vst.msk [vmem:[%s294_s6] sm:$0xff] %vm88_vm2, %v83_v23 }
  0xd7   :  { %v85_v26 = vpop.f32.mrf.mxu0 }
  0xd8   :  { %v91_v27 = vmul.f32 1.442695, %v90_v25 }
  0xd9   :  { %v187_v28 = vpop.f32.mrf.mxu0 }
  0xda   :  { %198 = vpow2.f32 %v91_v27 }
  0xe7   :  { %v199_v29 = vpop.eup %198 }
  0xe8   :  { %v93_v30 = vadd.f32 1.0, %v199_v29 }
  0xea   :  { %200 = vrcp.f32 %v93_v30 }
  0xf7   :  { %v201_v31 = vpop.eup %200 }
  0xf8   :  { %v96_v32 = vmul.f32 %v201_v31, %v83_v23 }
  0xfa   :  { %v97_v33 = vpack.c.bf16 %v96_v32, %v96_v32 }
  0xfc   :  { %193 = vmatmul.mubr.msk.bf16.vlgmr.msra.gmra.mxu1 %vm88_vm2, %v97_v33 }
 0x1bc   :  { %v148_v35 = vpop.f32.mrf.mxu1 }
 0x1bd   :  { %v149_v36 = vadd.f32 %v166_v34, %v148_v35 }
 0x1be   :  { %v194_v37 = vpop.f32.mrf.mxu1 }
 0x1bf   :  { %155 = vst.msk [vmem:[%s296_s5] sm:$0xff] %vm154_vm3, %v149_v36 }
 0x1c0   :  { %v151_v38 = vpop.f32.mrf.mxu1 }
 0x1c2   :  { %v195_v39 = vpop.f32.mrf.mxu1 }

// kernel: mul.193
= control target key start
LH: loop header
LB: loop body
LE: loop exit
PB: predicated region body
PF: predicated region fallthrough
CT: control target
= control target key end

     0   :  { %s34_s0 = inlined_call_operand.vmem [shape: f32[8,32], index: 0, kind: input, shape index: {}]   ;;  %s35_s1 = inlined_call_operand.vmem [shape: f32[8,32], index: 1, kind: input, shape index: {}]   ;;  %s36_s2 = inlined_call_operand.vmem [shape: f32[8,32], index: 2, kind: output, shape index: {}]  }
   0x1   :  { %v3_v0 = vld [vmem:[%s34_s0] sm:$0xff] }
   0x2   :  { %v4_v1 = vld [vmem:[%s35_s1] sm:$0xff] }
   0x3   :  { %v7_v2 = vmul.f32 %v4_v1, %v3_v0 }
   0x5   :  { %9 = vst [vmem:[%s36_s2] sm:$0xff] %v7_v2 }

// kernel: jvp__.15
= control target key start
LH: loop header
LB: loop body
LE: loop exit
PB: predicated region body
PF: predicated region fallthrough
CT: control target
= control target key end

     0   :  { %v189_v0 = vmov 0.0   ;;  %vm190_vm0 = vmmov 0   ;;  %vm38_vm1 = vcmask 261120   ;;  %vm147_vm2 = vcmask 785408   ;;  %s268_s1 = inlined_call_operand.vmem [shape: f32[32,32], index: 1, kind: input, shape index: {}]   ;;  %s269_s0 = inlined_call_operand.vmem [shape: f32[8,32], index: 0, kind: input, shape index: {}]   ;;  %s270_s3 = inlined_call_operand.vmem [shape: f32[32,96], index: 3, kind: input, shape index: {}]   ;;  %s271_s2 = inlined_call_operand.vmem [shape: f32[1,32], index: 2, kind: input, shape index: {}]   ;;  %s272_s6 = inlined_call_operand.vmem [shape: f32[8,32], index: 6, kind: output, shape index: {1}]   ;;  %s273_s4 = inlined_call_operand.vmem [shape: f32[1,96], index: 4, kind: input, shape index: {}]   ;;  %s274_s5 = inlined_call_operand.vmem [shape: f32[8,96], index: 5, kind: output, shape index: {0}]  }
   0x1   :  { %167 = vmatprep.subr.bf16.mxu0 %v189_v0  ;;  %v27_v1 = vld [vmem:[%s268_s1 + $0x10] sm:$0xff]  ;;  %v28_v2 = vld [vmem:[%s268_s1 + $0x18] sm:$0xff]  ;;  %v25_v3 = vld [vmem:[%s268_s1] sm:$0xff]  ;;  %171 = vmatprep.mubr.msk.bf16.mxu0 %vm190_vm0, %v189_v0 }
   0x2   :  { %v30_v4 = vpack.c.bf16 %v28_v2, %v27_v1  ;;  %v26_v5 = vld [vmem:[%s268_s1 + $0x8] sm:$0xff]  ;;  %175 = vmatprep.subr.bf16.mxu1 %v189_v0  ;;  %179 = vmatprep.mubr.msk.bf16.mxu1 %vm190_vm0, %v189_v0  ;;  %v23_v7 = vld [vmem:[%s269_s0] sm:$0xff]  ;;  %v93_v9 = vld [vmem:[%s270_s3 + $0x10] sm:$0xff] }
   0x3   :  { %v29_v6 = vpack.c.bf16 %v26_v5, %v25_v3  ;;  %v24_v8 = vpack.c.bf16 %v23_v7, %v23_v7  ;;  %v94_v10 = vld [vmem:[%s270_s3 + $0x18] sm:$0xff]  ;;  %v91_v12 = vld [vmem:[%s270_s3] sm:$0xff]  ;;  %v92_v13 = vld [vmem:[%s270_s3 + $0x8] sm:$0xff] }
   0x4   :  { %168 = vmatpush3.bf16.msra.mxu0 %v30_v4  ;;  %v96_v11 = vpack.c.bf16 %v94_v10, %v93_v9  ;;  %v95_v14 = vpack.c.bf16 %v92_v13, %v91_v12  ;;  %v157_v15 = vld [vmem:[%s271_s2] ss:$0 sm:$0xff] }
   0x5   :  { %169 = vmatprep.subr.bf16.mxu0 %v189_v0  ;;  %v159_v28 = vld [vmem:[%s273_s4] ss:$0 sm:$0xff] }
   0x6   :  { %176 = vmatpush3.bf16.msra.mxu1 %v96_v11 }
   0x7   :  { %177 = vmatprep.subr.bf16.mxu1 %v189_v0 }
   0x8   :  { %170 = vmatpush3.bf16.msra.mxu0 %v29_v6 }
   0xa   :  { %178 = vmatpush3.bf16.msra.mxu1 %v95_v14 }
   0xb   :  { %172 = vmatmul.mubr.msk.bf16.vlgmr.msra.gmra.mxu0 %vm38_vm1, %v24_v8 }
  0xcb   :  { %v76_v16 = vpop.f32.mrf.mxu0 }
  0xcc   :  { %v77_v17 = vadd.f32 %v157_v15, %v76_v16 }
  0xcd   :  { %v173_v18 = vpop.f32.mrf.mxu0 }
  0xce   :  { %82 = vst.msk [vmem:[%s272_s6] sm:$0xff] %vm38_vm1, %v77_v17  ;;  %v83_v19 = vsub.f32 0.0, %v77_v17 }
  0xcf   :  { %v79_v20 = vpop.f32.mrf.mxu0 }
  0xd0   :  { %v84_v21 = vmul.f32 1.442695, %v83_v19 }
  0xd1   :  { %v174_v22 = vpop.f32.mrf.mxu0 }
  0xd2   :  { %185 = vpow2.f32 %v84_v21 }
  0xdf   :  { %v186_v23 = vpop.eup %185 }
  0xe0   :  { %v86_v24 = vadd.f32 1.0, %v186_v23 }
  0xe2   :  { %187 = vrcp.f32 %v86_v24 }
  0xef   :  { %v188_v25 = vpop.eup %187 }
  0xf0   :  { %v89_v26 = vmul.f32 %v188_v25, %v77_v17 }
  0xf2   :  { %v90_v27 = vpack.c.bf16 %v89_v26, %v89_v26 }
  0xf4   :  { %180 = vmatmul.mubr.msk.bf16.vlgmr.msra.gmra.mxu1 %vm38_vm1, %v90_v27 }
 0x1b4   :  { %v141_v29 = vpop.f32.mrf.mxu1 }
 0x1b5   :  { %v142_v30 = vadd.f32 %v159_v28, %v141_v29 }
 0x1b6   :  { %v181_v31 = vpop.f32.mrf.mxu1 }
 0x1b7   :  { %148 = vst.msk [vmem:[%s274_s5] sm:$0xff] %vm147_vm2, %v142_v30 }
 0x1b8   :  { %v144_v32 = vpop.f32.mrf.mxu1 }
 0x1ba   :  { %v182_v33 = vpop.f32.mrf.mxu1 }

// kernel: jvp__.19
= control target key start
LH: loop header
LB: loop body
LE: loop exit
PB: predicated region body
PF: predicated region fallthrough
CT: control target
= control target key end

     0   :  { %s247_s0 = inlined_call_operand.vmem [shape: f32[8,32], index: 0, kind: input, shape index: {}]   ;;  %s248_s1 = inlined_call_operand.vmem [shape: f32[32,16], index: 1, kind: input, shape index: {}]   ;;  %s249_s2 = inlined_call_operand.vmem [shape: f32[1,16], index: 2, kind: input, shape index: {}]   ;;  %s250_s3 = inlined_call_operand.vmem [shape: f32[1,16], index: 3, kind: input, shape index: {}]   ;;  %s251_s4 = inlined_call_operand.<no memory space> [shape: f32[1,1], index: 4, kind: input, shape index: {}]   ;;  %s252_s5 = inlined_call_operand.hbm [shape: f32[1,1], index: 5, kind: output, shape index: {0}]   ;;  %s253_s6 = inlined_call_operand.vmem [shape: f32[8,16], index: 6, kind: output, shape index: {1}]  }
   0x1   :  { %v12_v0 = vstv %s251_s4 }
   0x2   :  { %13 = vst [vmem:[#allocation2] sm:$0x1] %v12_v0 }
   0x3   :  { %v30_v1 = vld [vmem:[%s248_s1 + $0x10] sm:$0xff]  ;;  %v31_v2 = vld [vmem:[%s248_s1 + $0x18] sm:$0xff]  ;;  %v28_v3 = vld [vmem:[%s248_s1] sm:$0xff]  ;;  %v177_v4 = vmov 0.0   ;;  %vm178_vm0 = vmmov 0  }
   0x4   :  { %140 = vmatprep.subr.bf16.mxu0 %v177_v4  ;;  %v33_v5 = vpack.c.bf16 %v31_v2, %v30_v1  ;;  %v29_v6 = vld [vmem:[%s248_s1 + $0x8] sm:$0xff]  ;;  %144 = vmatprep.mubr.msk.bf16.mxu0 %vm178_vm0, %v177_v4 }
   0x5   :  { %14 = vsyncpa [#allocation4], 0  ;;  %v32_v7 = vpack.c.bf16 %v29_v6, %v28_v3  ;;  %v26_v8 = vld [vmem:[%s247_s0] sm:$0xff]  ;;  %vm41_vm1 = vcmask 261120   ;;  %vm85_vm2 = vcmask 130048   ;;  %vm114_vm3 = vcmask 0  }
   0x6   :  { %141 = vmatpush3.bf16.msra.mxu0 %v33_v5  ;;  %v27_v9 = vpack.c.bf16 %v26_v8, %v26_v8  ;;  %v134_v10 = vld [vmem:[%s249_s2] ss:$0 sm:$0xff] }
   0x7   :  { %142 = vmatprep.subr.bf16.mxu0 %v177_v4  ;;  %v136_v21 = vld [vmem:[%s250_s3] ss:$0 sm:$0xff] }
   0x9   :  { %v111_v29 = vld [vmem:[#allocation2] sm:$0x1] }
   0xa   :  { %143 = vmatpush3.bf16.msra.mxu0 %v32_v7  ;;  %v112_v32 = vmul.f32 8.0, %v111_v29 }
   0xd   :  { %145 = vmatmul.mubr.msk.bf16.vlgmr.msra.gmra.mxu0 %vm41_vm1, %v27_v9 }
  0xcd   :  { %v79_v11 = vpop.f32.mrf.mxu0 }
  0xce   :  { %v80_v12 = vadd.f32 %v134_v10, %v79_v11 }
  0xcf   :  { %v146_v13 = vpop.f32.mrf.mxu0 }
  0xd0   :  { %v87_v14 = vsub.f32 0.0, %v80_v12  ;;  %86 = vst.msk [vmem:[%s253_s6] sm:$0xff] %vm85_vm2, %v80_v12  ;;  %s179_s6 = smov [#allocation3]  }
  0xd1   :  { %v82_v15 = vpop.f32.mrf.mxu0  ;;  %s122_s11 = sshll.u32 %s179_s6, 4  ;;  %s123_s11 = int_to_ptr.vmem [resolvable:$true] %s122_s11 }
  0xd2   :  { %v88_v16 = vmul.f32 1.442695, %v87_v14  ;;  %s155_s3 = scalar_lea.vmem %s123_s11, 16  ;;  %s159_s12 = scalar_lea.vmem %s123_s11, 32 }
  0xd3   :  { %v147_v17 = vpop.f32.mrf.mxu0  ;;  %p156_p0 = scmp.ne.s32.totalorder %s123_s11, %s155_s3  ;;  %p160_p1 = scmp.lt.s32.totalorder %s123_s11, %s123_s11 }
  0xd4   :  { %151 = vpow2.f32 %v88_v16  ;;  %p161_p2 = scmp.lt.s32.totalorder %s159_s12, %s155_s3 }
  0xd6   :  { %p162_p3 = por %p161_p2, %p160_p1 }
  0xd8   :  { %p163_p4 = pnand %p162_p3, %p156_p0 }
  0xe1   :  { %v152_v18 = vpop.eup %151 }
  0xe2   :  { %v90_v19 = vadd.f32 1.0, %v152_v18 }
  0xe4   :  { %153 = vrcp.f32 %v90_v19 }
  0xf1   :  { %v154_v20 = vpop.eup %153 }
  0xf2   :  { %v93_v22 = vmul.f32 %v154_v20, %v80_v12 }
  0xf4   :  { %v101_v23 = vmul.f32 %v136_v21, %v93_v22 }
  0xf6   :  { %v102_v24 = vsel %vm85_vm2, %v101_v23, 0.0 }
  0xf7   :  { %103 = vadd.xlane.f32.xlu0 %v102_v24 }
 0x180   :  { %v104_v25 = vpop.xlane.xlu0 %103 }
 0x181   :  { %v105_v26 = vrot.slane %v104_v25, 4 }
 0x183   :  { %v106_v27 = vadd.f32 %v105_v26, %v104_v25 }
 0x185   :  { %v107_v28 = vrot.slane %v106_v27, 2 }
 0x187   :  { %v108_v30 = vadd.f32 %v107_v28, %v106_v27 }
 0x189   :  { %v109_v31 = vrot.slane %v108_v30, 1 }
 0x18b   :  { %v110_v33 = vadd.f32 %v109_v31, %v108_v30 }
 0x18d   :  { %v113_v34 = vadd.f32 %v112_v32, %v110_v33 }
 0x18f   :  { %115 = vst.msk [vmem:[#allocation3] sm:$0x1] %vm114_vm3, %v113_v34 }
 0x190   :  { %166 = shalt.err (!%p163_p4)
}
 0x191   :  { %125 = dma.vmem_to_hbm [thread:$0]  %s123_s11, 16, %s252_s5, [#allocation4]  }
 0x192   :  { %175 = dma.done.wait [#allocation4], 16  }
 0x193   :  { %176 = vsyncadd [#allocation4], 4294967280 }
 0x194   :  { %133 = vsyncpa [#allocation4], 1 }

</bundles_post_ra>
